<compile_context>
chip_gen: v7x
topology: tpu7x:2x2x1
jax: 0.10.0
libtpu: 0.0.40
codegen_flags: <defaults>
</compile_context>

<pallas_src>
import functools
import math

import jax
import jax.numpy as jnp
from jax.experimental import pallas as pl
from jax.experimental.pallas import tpu as pltpu


# ----------------------------------------------------------------------------
# Fused Pallas kernel: embeddings-LN -> L encoder layers -> CLS -> classifier
# ----------------------------------------------------------------------------

def _bert_fused_kernel(x_ref, mask_ref, emb_g_ref, emb_b_ref,
                       qkv_w_ref, qkv_b_ref, o_w_ref, o_b_ref,
                       ln1_g_ref, ln1_b_ref, ff1_w_ref, ff1_b_ref,
                       ff2_w_ref, ff2_b_ref, ln2_g_ref, ln2_b_ref,
                       cw1_ref, cb1_ref, cw2_ref, cb2_ref,
                       o_ref,
                       *, B, S, D, H, L, eps, out_rows):
    dh = D // H

    def layernorm(x, g, b):
        mean = jnp.mean(x, axis=-1, keepdims=True)
        var = jnp.mean((x - mean) ** 2, axis=-1, keepdims=True)
        return (x - mean) * jax.lax.rsqrt(var + eps) * g + b

    def mm(a, w):
        # Weights are pre-cast to bf16 on the host; f32 accumulation on MXU.
        return jnp.dot(a.astype(jnp.bfloat16), w,
                       preferred_element_type=jnp.float32)

    def heads(t):
        # (B*S, D) -> (B*H, S, dh), b-major / h-minor, via static slices.
        return jnp.stack([t[b * S:(b + 1) * S, h * dh:(h + 1) * dh]
                          for b in range(B) for h in range(H)], axis=0)

    # --- embeddings LayerNorm (no residual) ---
    x = layernorm(x_ref[...], emb_g_ref[...], emb_b_ref[...])      # (B*S, D) f32

    mask = mask_ref[...]                                            # (B*H, 1, S)

    # --- encoder layers (static unroll, stacked weights indexed by l) ---
    for l in range(L):
        # fused QKV projection: (B*S, D) @ (D, 3D); 1/sqrt(dh) already folded
        # into the Q columns + bias.
        qkv = mm(x, qkv_w_ref[l]) + qkv_b_ref[l]                    # (B*S, 3D)
        q = qkv[:, 0 * D:1 * D]
        k = qkv[:, 1 * D:2 * D]
        v = qkv[:, 2 * D:3 * D]

        q_bh = heads(q).astype(jnp.bfloat16)                        # (B*H, S, dh)
        k_bh = heads(k).astype(jnp.bfloat16)
        v_bh = heads(v)                                             # f32

        # batched attention over the (B*H) head-batch axis
        s = jnp.einsum('bqd,bkd->bqk', q_bh, k_bh,
                       preferred_element_type=jnp.float32) + mask   # (B*H, S, S)
        s = s - jnp.max(s, axis=-1, keepdims=True)
        p = jnp.exp(s)
        p = p * pl.reciprocal(jnp.sum(p, axis=-1, keepdims=True),
                              approx=True)
        # keep probabilities in f32 for the context contraction (accuracy)
        ctx_bh = jnp.einsum('bqk,bkd->bqd', p, v_bh,
                            preferred_element_type=jnp.float32)     # (B*H, S, dh)

        # merge heads back to (B*S, D), fully register-resident
        ctx = jnp.concatenate(
            [jnp.concatenate([ctx_bh[b * H + h] for h in range(H)], axis=-1)
             for b in range(B)], axis=0)                            # (B*S, D)

        attn_out = mm(ctx, o_w_ref[l]) + o_b_ref[l]
        x = layernorm(attn_out + x, ln1_g_ref[l], ln1_b_ref[l])

        hff = mm(x, ff1_w_ref[l]) + ff1_b_ref[l]
        # TODO(synk): HF BERT uses exact erf-GELU; tanh approximation used here.
        hff = jax.nn.gelu(hff, approximate=True)
        ff = mm(hff, ff2_w_ref[l]) + ff2_b_ref[l]
        x = layernorm(ff + x, ln2_g_ref[l], ln2_b_ref[l])

    # --- classifier head on the [CLS] rows (row b*S of x), sublane-padded ---
    pieces = [x[b * S:b * S + 1, :] for b in range(B)]
    if out_rows > B:
        pieces.append(jnp.zeros((out_rows - B, D), jnp.float32))
    cls_tok = jnp.concatenate(pieces, axis=0)                       # (out_rows, D)

    hcls = jnp.maximum(mm(cls_tok, cw1_ref[...]) + cb1_ref[...], 0.0)
    logits = mm(hcls, cw2_ref[...]) + cb2_ref[...]                  # (out_rows, 128)
    o_ref[...] = logits.astype(o_ref.dtype)                         # full-tile vst


def _full_spec(shape):
    zeros = (0,) * len(shape)
    return pl.BlockSpec(shape, lambda i, _z=zeros: _z)


# ----------------------------------------------------------------------------
# Parameter construction (deterministic, synthetic "pretrained" BERT)
# ----------------------------------------------------------------------------

def init_params(key, *, vocab=100, max_pos=16, type_vocab=2,
                hidden=32, heads=2, ffn=64, layers=2, h_cls=16, d_out=3,
                out_pad=128):
    std = 0.02
    ks = iter(jax.random.split(key, 64))

    def w(shape):
        return jax.random.normal(next(ks), shape, jnp.float32) * std

    D, F, L, H = hidden, ffn, layers, heads
    scale = 1.0 / math.sqrt(D // H)
    bf16 = jnp.bfloat16

    emb = dict(
        word=w((vocab, D)),
        position=w((max_pos, D)),
        token_type=w((type_vocab, D)),
        ln_g=jnp.ones((1, D), jnp.float32),
        ln_b=jnp.zeros((1, D), jnp.float32),
    )

    qkv_w, qkv_b, o_w, ff1_w, ff2_w = [], [], [], [], []
    for _ in range(L):
        wq, wk, wv = w((D, D)), w((D, D)), w((D, D))
        bq = jnp.zeros((D,), jnp.float32)
        bk = jnp.zeros((D,), jnp.float32)
        bv = jnp.zeros((D,), jnp.float32)
        # fold 1/sqrt(dh) attention scale into the Q projection (weight + bias)
        qkv_w.append(jnp.concatenate([wq * scale, wk, wv], axis=1))
        qkv_b.append(jnp.concatenate([bq * scale, bk, bv])[None, :])
        o_w.append(w((D, D)))
        ff1_w.append(w((D, F)))
        ff2_w.append(w((F, D)))

    enc = dict(
        # weights pre-cast to bf16 (f32 accumulation happens in the kernel)
        qkv_w=jnp.stack(qkv_w).astype(bf16),
        qkv_b=jnp.stack(qkv_b),
        o_w=jnp.stack(o_w).astype(bf16),
        o_b=jnp.zeros((L, 1, D), jnp.float32),
        ln1_g=jnp.ones((L, 1, D), jnp.float32),
        ln1_b=jnp.zeros((L, 1, D), jnp.float32),
        ff1_w=jnp.stack(ff1_w).astype(bf16),
        ff1_b=jnp.zeros((L, 1, F), jnp.float32),
        ff2_w=jnp.stack(ff2_w).astype(bf16),
        ff2_b=jnp.zeros((L, 1, D), jnp.float32),
        ln2_g=jnp.ones((L, 1, D), jnp.float32),
        ln2_b=jnp.zeros((L, 1, D), jnp.float32),
    )

    w2 = w((h_cls, d_out))
    cls = dict(
        w1=w((D, h_cls)).astype(bf16),
        b1=jnp.zeros((1, h_cls), jnp.float32),
        # pad the final projection to 128 output lanes (lane-dense store)
        w2p=jnp.pad(w2, ((0, 0), (0, out_pad - d_out))).astype(bf16),
        b2p=jnp.zeros((1, out_pad), jnp.float32),
    )

    cfg = dict(hidden=D, heads=H, layers=L, d_out=d_out, out_pad=out_pad)
    return dict(config=cfg, emb=emb, enc=enc, cls=cls)


# ----------------------------------------------------------------------------
# Forward pass (embedding gathers in JAX, everything else in one Pallas call)
# ----------------------------------------------------------------------------

def bert_classifier_forward(params, input_ids, attention_mask):
    cfg = params["config"]
    B, S = input_ids.shape
    D, H, L = cfg["hidden"], cfg["heads"], cfg["layers"]
    out_pad, d_out = cfg["out_pad"], cfg["d_out"]
    out_rows = ((B + 7) // 8) * 8           # full sublane tile for the output

    # --- embeddings (table gathers stay in plain JAX) ---
    emb = params["emb"]
    tok = jnp.take(emb["word"], input_ids, axis=0)          # (B, S, D)
    pos = emb["position"][:S][None]                          # (1, S, D)
    # TODO(synk): token_type_ids hard-coded to zeros (PyTorch default).
    typ = emb["token_type"][0][None, None]                   # (1, 1, D)
    x = (tok + pos + typ).reshape(B * S, D)

    # additive attention-mask bias, expanded to the (B*H) head-batch order
    # used inside the kernel (b-major, h-minor)
    mask_bias = (1.0 - attention_mask.astype(jnp.float32)) * -10000.0   # (B, S)
    mask_bh = jnp.repeat(mask_bias, H, axis=0).reshape(B * H, 1, S)

    enc, c = params["enc"], params["cls"]
    args = [x, mask_bh, emb["ln_g"], emb["ln_b"],
            enc["qkv_w"], enc["qkv_b"], enc["o_w"], enc["o_b"],
            enc["ln1_g"], enc["ln1_b"], enc["ff1_w"], enc["ff1_b"],
            enc["ff2_w"], enc["ff2_b"], enc["ln2_g"], enc["ln2_b"],
            c["w1"], c["b1"], c["w2p"], c["b2p"]]

    logits_pad = pl.pallas_call(
        functools.partial(_bert_fused_kernel,
                          B=B, S=S, D=D, H=H, L=L, eps=1e-12,
                          out_rows=out_rows),
        out_shape=jax.ShapeDtypeStruct((out_rows, out_pad), jnp.float32),
        grid=(1,),
        in_specs=[_full_spec(a.shape) for a in args],
        out_specs=pl.BlockSpec((out_rows, out_pad), lambda i: (0, 0)),
        compiler_params=pltpu.CompilerParams(
            dimension_semantics=("arbitrary",)),
    )(*args)

    # TODO(synk): for large B add a leading "parallel" grid axis over batch
    # tiles (v7x second TensorCore) and set vmem_limit_bytes when scaling to
    # real BERT dims (D=768, S=512, L=12) to respect the v7x 64 MiB budget.
    return logits_pad[:B, :d_out]


# ----------------------------------------------------------------------------
# Main
# ----------------------------------------------------------------------------

if __name__ == "__main__":
    key = jax.random.PRNGKey(0)
    k_params, k_ids = jax.random.split(key)

    B, S, VOCAB = 2, 8, 100
    params = init_params(k_params, vocab=VOCAB, max_pos=16, hidden=32,
                         heads=2, ffn=64, layers=2, h_cls=16, d_out=3)

    input_ids = jax.random.randint(k_ids, (B, S), 0, VOCAB, dtype=jnp.int32)
    attention_mask = jnp.array(
        [[1, 1, 1, 1, 1, 1, 1, 1],
         [1, 1, 1, 1, 1, 1, 0, 0]], dtype=jnp.int32)

    logits = bert_classifier_forward(params, input_ids, attention_mask)
    jax.block_until_ready(logits)
    assert logits.shape == (B, 3)
    print("KERNEL_OK")
</pallas_src>

<mosaic_0001>
module attributes {stable_mosaic.version = 11 : i64} {
  func.func @_bert_fused_kernel(%arg0: i32, %arg1: memref<16x32xf32, #tpu.memory_space<vmem>>, %arg2: memref<4x1x8xf32, #tpu.memory_space<vmem>>, %arg3: memref<1x32xf32, #tpu.memory_space<vmem>>, %arg4: memref<1x32xf32, #tpu.memory_space<vmem>>, %arg5: memref<2x32x96xbf16, #tpu.memory_space<vmem>>, %arg6: memref<2x1x96xf32, #tpu.memory_space<vmem>>, %arg7: memref<2x32x32xbf16, #tpu.memory_space<vmem>>, %arg8: memref<2x1x32xf32, #tpu.memory_space<vmem>>, %arg9: memref<2x1x32xf32, #tpu.memory_space<vmem>>, %arg10: memref<2x1x32xf32, #tpu.memory_space<vmem>>, %arg11: memref<2x32x64xbf16, #tpu.memory_space<vmem>>, %arg12: memref<2x1x64xf32, #tpu.memory_space<vmem>>, %arg13: memref<2x64x32xbf16, #tpu.memory_space<vmem>>, %arg14: memref<2x1x32xf32, #tpu.memory_space<vmem>>, %arg15: memref<2x1x32xf32, #tpu.memory_space<vmem>>, %arg16: memref<2x1x32xf32, #tpu.memory_space<vmem>>, %arg17: memref<32x16xbf16, #tpu.memory_space<vmem>>, %arg18: memref<1x16xf32, #tpu.memory_space<vmem>>, %arg19: memref<16x128xbf16, #tpu.memory_space<vmem>>, %arg20: memref<1x128xf32, #tpu.memory_space<vmem>>, %arg21: memref<8x128xf32, #tpu.memory_space<vmem>>) attributes {dimension_semantics = [#tpu.dimension_semantics<arbitrary>], iteration_bounds = array<i64: 1>, scalar_prefetch = 0 : i64, scratch_operands = 0 : i64, tpu.core_type = #tpu.core_type<tc>, window_params = [{pipeline_mode = #tpu.pipeline_mode<synchronous>, transform_indices = @transform_0, window_bounds = array<i64: 16, 32>}, {pipeline_mode = #tpu.pipeline_mode<synchronous>, transform_indices = @transform_1, window_bounds = array<i64: 4, 1, 8>}, {pipeline_mode = #tpu.pipeline_mode<synchronous>, transform_indices = @transform_2, window_bounds = array<i64: 1, 32>}, {pipeline_mode = #tpu.pipeline_mode<synchronous>, transform_indices = @transform_3, window_bounds = array<i64: 1, 32>}, {pipeline_mode = #tpu.pipeline_mode<synchronous>, transform_indices = @transform_4, window_bounds = array<i64: 2, 32, 96>}, {pipeline_mode = #tpu.pipeline_mode<synchronous>, transform_indices = @transform_5, window_bounds = array<i64: 2, 1, 96>}, {pipeline_mode = #tpu.pipeline_mode<synchronous>, transform_indices = @transform_6, window_bounds = array<i64: 2, 32, 32>}, {pipeline_mode = #tpu.pipeline_mode<synchronous>, transform_indices = @transform_7, window_bounds = array<i64: 2, 1, 32>}, {pipeline_mode = #tpu.pipeline_mode<synchronous>, transform_indices = @transform_8, window_bounds = array<i64: 2, 1, 32>}, {pipeline_mode = #tpu.pipeline_mode<synchronous>, transform_indices = @transform_9, window_bounds = array<i64: 2, 1, 32>}, {pipeline_mode = #tpu.pipeline_mode<synchronous>, transform_indices = @transform_10, window_bounds = array<i64: 2, 32, 64>}, {pipeline_mode = #tpu.pipeline_mode<synchronous>, transform_indices = @transform_11, window_bounds = array<i64: 2, 1, 64>}, {pipeline_mode = #tpu.pipeline_mode<synchronous>, transform_indices = @transform_12, window_bounds = array<i64: 2, 64, 32>}, {pipeline_mode = #tpu.pipeline_mode<synchronous>, transform_indices = @transform_13, window_bounds = array<i64: 2, 1, 32>}, {pipeline_mode = #tpu.pipeline_mode<synchronous>, transform_indices = @transform_14, window_bounds = array<i64: 2, 1, 32>}, {pipeline_mode = #tpu.pipeline_mode<synchronous>, transform_indices = @transform_15, window_bounds = array<i64: 2, 1, 32>}, {pipeline_mode = #tpu.pipeline_mode<synchronous>, transform_indices = @transform_16, window_bounds = array<i64: 32, 16>}, {pipeline_mode = #tpu.pipeline_mode<synchronous>, transform_indices = @transform_17, window_bounds = array<i64: 1, 16>}, {pipeline_mode = #tpu.pipeline_mode<synchronous>, transform_indices = @transform_18, window_bounds = array<i64: 16, 128>}, {pipeline_mode = #tpu.pipeline_mode<synchronous>, transform_indices = @transform_19, window_bounds = array<i64: 1, 128>}, {pipeline_mode = #tpu.pipeline_mode<synchronous>, transform_indices = @transform_20, window_bounds = array<i64: 8, 128>}]} {
    %c0 = arith.constant 0 : index
    %c0_0 = arith.constant 0 : index
    %0 = vector.load %arg1[%c0, %c0_0] : memref<16x32xf32, #tpu.memory_space<vmem>>, vector<16x32xf32>
    %c0_1 = arith.constant 0 : index
    %c0_2 = arith.constant 0 : index
    %1 = vector.load %arg3[%c0_1, %c0_2] : memref<1x32xf32, #tpu.memory_space<vmem>>, vector<1x32xf32>
    %c0_3 = arith.constant 0 : index
    %c0_4 = arith.constant 0 : index
    %2 = vector.load %arg4[%c0_3, %c0_4] : memref<1x32xf32, #tpu.memory_space<vmem>>, vector<1x32xf32>
    %cst = arith.constant dense<0.000000e+00> : vector<16xf32>
    %3 = vector.multi_reduction <add>, %0, %cst [1] : vector<16x32xf32> to vector<16xf32>
    %4 = vector.shape_cast %3 : vector<16xf32> to vector<16x1xf32>
    %cst_5 = arith.constant 3.200000e+01 : f32
    %5 = vector.broadcast %cst_5 : f32 to vector<16x1xf32>
    %6 = arith.divf %4, %5 : vector<16x1xf32>
    %7 = vector.broadcast %6 : vector<16x1xf32> to vector<16x32xf32>
    %8 = arith.subf %0, %7 : vector<16x32xf32>
    %9 = arith.mulf %8, %8 : vector<16x32xf32>
    %cst_6 = arith.constant dense<0.000000e+00> : vector<16xf32>
    %10 = vector.multi_reduction <add>, %9, %cst_6 [1] : vector<16x32xf32> to vector<16xf32>
    %11 = vector.shape_cast %10 : vector<16xf32> to vector<16x1xf32>
    %cst_7 = arith.constant 3.200000e+01 : f32
    %12 = vector.broadcast %cst_7 : f32 to vector<16x1xf32>
    %13 = arith.divf %11, %12 : vector<16x1xf32>
    %14 = vector.broadcast %6 : vector<16x1xf32> to vector<16x32xf32>
    %15 = arith.subf %0, %14 : vector<16x32xf32>
    %cst_8 = arith.constant 9.99999996E-13 : f32
    %16 = vector.broadcast %cst_8 : f32 to vector<16x1xf32>
    %17 = arith.addf %13, %16 : vector<16x1xf32>
    %18 = math.rsqrt %17 : vector<16x1xf32>
    %19 = vector.broadcast %18 : vector<16x1xf32> to vector<16x32xf32>
    %20 = arith.mulf %15, %19 : vector<16x32xf32>
    %21 = vector.broadcast %1 : vector<1x32xf32> to vector<16x32xf32>
    %22 = arith.mulf %20, %21 : vector<16x32xf32>
    %23 = vector.broadcast %2 : vector<1x32xf32> to vector<16x32xf32>
    %24 = arith.addf %22, %23 : vector<16x32xf32>
    %c0_9 = arith.constant 0 : index
    %c0_10 = arith.constant 0 : index
    %c0_11 = arith.constant 0 : index
    %25 = vector.load %arg2[%c0_9, %c0_10, %c0_11] : memref<4x1x8xf32, #tpu.memory_space<vmem>>, vector<4x1x8xf32>
    %c0_12 = arith.constant 0 : index
    %c0_13 = arith.constant 0 : index
    %c0_14 = arith.constant 0 : index
    %26 = vector.load %arg5[%c0_12, %c0_13, %c0_14] : memref<2x32x96xbf16, #tpu.memory_space<vmem>>, vector<1x32x96xbf16>
    %27 = vector.shape_cast %26 : vector<1x32x96xbf16> to vector<32x96xbf16>
    %28 = arith.truncf %24 : vector<16x32xf32> to vector<16x32xbf16>
    %cst_15 = arith.constant dense<0.000000e+00> : vector<16x96xf32>
    %29 = tpu.matmul %28, %27, %cst_15 {dimension_numbers = #tpu.dot_dimension_numbers<[1], [0], [0], [1], [0, 0, 1, 1], [], []>} : vector<16x32xbf16>, vector<32x96xbf16>, vector<16x96xf32> -> vector<16x96xf32>
    %c0_16 = arith.constant 0 : index
    %c0_17 = arith.constant 0 : index
    %c0_18 = arith.constant 0 : index
    %30 = vector.load %arg6[%c0_16, %c0_17, %c0_18] : memref<2x1x96xf32, #tpu.memory_space<vmem>>, vector<1x1x96xf32>
    %31 = vector.shape_cast %30 : vector<1x1x96xf32> to vector<1x96xf32>
    %32 = vector.broadcast %31 : vector<1x96xf32> to vector<16x96xf32>
    %33 = arith.addf %29, %32 : vector<16x96xf32>
    %34 = vector.extract_strided_slice %33 {offsets = [0, 0], sizes = [16, 32], strides = [1, 1]} : vector<16x96xf32> to vector<16x32xf32>
    %35 = vector.extract_strided_slice %33 {offsets = [0, 32], sizes = [16, 32], strides = [1, 1]} : vector<16x96xf32> to vector<16x32xf32>
    %36 = vector.extract_strided_slice %33 {offsets = [0, 64], sizes = [16, 32], strides = [1, 1]} : vector<16x96xf32> to vector<16x32xf32>
    %37 = vector.extract_strided_slice %34 {offsets = [0, 0], sizes = [8, 16], strides = [1, 1]} : vector<16x32xf32> to vector<8x16xf32>
    %38 = vector.extract_strided_slice %34 {offsets = [0, 16], sizes = [8, 16], strides = [1, 1]} : vector<16x32xf32> to vector<8x16xf32>
    %39 = vector.extract_strided_slice %34 {offsets = [8, 0], sizes = [8, 16], strides = [1, 1]} : vector<16x32xf32> to vector<8x16xf32>
    %40 = vector.extract_strided_slice %34 {offsets = [8, 16], sizes = [8, 16], strides = [1, 1]} : vector<16x32xf32> to vector<8x16xf32>
    %41 = vector.shape_cast %37 : vector<8x16xf32> to vector<1x8x16xf32>
    %42 = vector.shape_cast %38 : vector<8x16xf32> to vector<1x8x16xf32>
    %43 = vector.shape_cast %39 : vector<8x16xf32> to vector<1x8x16xf32>
    %44 = vector.shape_cast %40 : vector<8x16xf32> to vector<1x8x16xf32>
    %45 = tpu.concatenate %41, %42, %43, %44 in 0 : vector<1x8x16xf32>, vector<1x8x16xf32>, vector<1x8x16xf32>, vector<1x8x16xf32> -> vector<4x8x16xf32>
    %46 = arith.truncf %45 : vector<4x8x16xf32> to vector<4x8x16xbf16>
    %47 = vector.extract_strided_slice %35 {offsets = [0, 0], sizes = [8, 16], strides = [1, 1]} : vector<16x32xf32> to vector<8x16xf32>
    %48 = vector.extract_strided_slice %35 {offsets = [0, 16], sizes = [8, 16], strides = [1, 1]} : vector<16x32xf32> to vector<8x16xf32>
    %49 = vector.extract_strided_slice %35 {offsets = [8, 0], sizes = [8, 16], strides = [1, 1]} : vector<16x32xf32> to vector<8x16xf32>
    %50 = vector.extract_strided_slice %35 {offsets = [8, 16], sizes = [8, 16], strides = [1, 1]} : vector<16x32xf32> to vector<8x16xf32>
    %51 = vector.shape_cast %47 : vector<8x16xf32> to vector<1x8x16xf32>
    %52 = vector.shape_cast %48 : vector<8x16xf32> to vector<1x8x16xf32>
    %53 = vector.shape_cast %49 : vector<8x16xf32> to vector<1x8x16xf32>
    %54 = vector.shape_cast %50 : vector<8x16xf32> to vector<1x8x16xf32>
    %55 = tpu.concatenate %51, %52, %53, %54 in 0 : vector<1x8x16xf32>, vector<1x8x16xf32>, vector<1x8x16xf32>, vector<1x8x16xf32> -> vector<4x8x16xf32>
    %56 = arith.truncf %55 : vector<4x8x16xf32> to vector<4x8x16xbf16>
    %57 = vector.extract_strided_slice %36 {offsets = [0, 0], sizes = [8, 16], strides = [1, 1]} : vector<16x32xf32> to vector<8x16xf32>
    %58 = vector.extract_strided_slice %36 {offsets = [0, 16], sizes = [8, 16], strides = [1, 1]} : vector<16x32xf32> to vector<8x16xf32>
    %59 = vector.extract_strided_slice %36 {offsets = [8, 0], sizes = [8, 16], strides = [1, 1]} : vector<16x32xf32> to vector<8x16xf32>
    %60 = vector.extract_strided_slice %36 {offsets = [8, 16], sizes = [8, 16], strides = [1, 1]} : vector<16x32xf32> to vector<8x16xf32>
    %61 = vector.shape_cast %57 : vector<8x16xf32> to vector<1x8x16xf32>
    %62 = vector.shape_cast %58 : vector<8x16xf32> to vector<1x8x16xf32>
    %63 = vector.shape_cast %59 : vector<8x16xf32> to vector<1x8x16xf32>
    %64 = vector.shape_cast %60 : vector<8x16xf32> to vector<1x8x16xf32>
    %65 = tpu.concatenate %61, %62, %63, %64 in 0 : vector<1x8x16xf32>, vector<1x8x16xf32>, vector<1x8x16xf32>, vector<1x8x16xf32> -> vector<4x8x16xf32>
    "tpu.trace_start"() <{level = 10 : i32, message = "bqd,bkd->bqk"}> : () -> ()
    %cst_19 = arith.constant dense<0.000000e+00> : vector<4x8x8xf32>
    %66 = tpu.matmul %46, %56, %cst_19 {dimension_numbers = #tpu.dot_dimension_numbers<[2], [2], [1], [1], [0, 0, 0, 1, 1, 1], [0], [0]>} : vector<4x8x16xbf16>, vector<4x8x16xbf16>, vector<4x8x8xf32> -> vector<4x8x8xf32>
    "tpu.trace_stop"() : () -> ()
    %67 = vector.broadcast %25 : vector<4x1x8xf32> to vector<4x8x8xf32>
    %68 = arith.addf %66, %67 : vector<4x8x8xf32>
    %cst_20 = arith.constant dense<0xFF800000> : vector<4x8xf32>
    %69 = vector.multi_reduction <maximumf>, %68, %cst_20 [2] : vector<4x8x8xf32> to vector<4x8xf32>
    %70 = vector.shape_cast %69 : vector<4x8xf32> to vector<4x8x1xf32>
    %71 = vector.broadcast %70 : vector<4x8x1xf32> to vector<4x8x8xf32>
    %72 = arith.subf %68, %71 : vector<4x8x8xf32>
    %73 = math.exp %72 : vector<4x8x8xf32>
    %cst_21 = arith.constant dense<0.000000e+00> : vector<4x8xf32>
    %74 = vector.multi_reduction <add>, %73, %cst_21 [2] : vector<4x8x8xf32> to vector<4x8xf32>
    %75 = vector.shape_cast %74 : vector<4x8xf32> to vector<4x8x1xf32>
    %76 = tpu.reciprocal %75 {approx = true} : vector<4x8x1xf32> -> vector<4x8x1xf32>
    %77 = vector.broadcast %76 : vector<4x8x1xf32> to vector<4x8x8xf32>
    %78 = arith.mulf %73, %77 : vector<4x8x8xf32>
    "tpu.trace_start"() <{level = 10 : i32, message = "bqk,bkd->bqd"}> : () -> ()
    %cst_22 = arith.constant dense<0.000000e+00> : vector<4x8x16xf32>
    %79 = tpu.matmul %78, %65, %cst_22 {dimension_numbers = #tpu.dot_dimension_numbers<[2], [1], [1], [2], [0, 0, 0, 1, 1, 2], [0], [0]>} : vector<4x8x8xf32>, vector<4x8x16xf32>, vector<4x8x16xf32> -> vector<4x8x16xf32>
    "tpu.trace_stop"() : () -> ()
    %80 = vector.extract_strided_slice %79 {offsets = [0, 0, 0], sizes = [1, 8, 16], strides = [1, 1, 1]} : vector<4x8x16xf32> to vector<1x8x16xf32>
    %81 = vector.shape_cast %80 : vector<1x8x16xf32> to vector<8x16xf32>
    %82 = vector.extract_strided_slice %79 {offsets = [1, 0, 0], sizes = [1, 8, 16], strides = [1, 1, 1]} : vector<4x8x16xf32> to vector<1x8x16xf32>
    %83 = vector.shape_cast %82 : vector<1x8x16xf32> to vector<8x16xf32>
    %84 = tpu.concatenate %81, %83 in 1 : vector<8x16xf32>, vector<8x16xf32> -> vector<8x32xf32>
    %85 = vector.extract_strided_slice %79 {offsets = [2, 0, 0], sizes = [1, 8, 16], strides = [1, 1, 1]} : vector<4x8x16xf32> to vector<1x8x16xf32>
    %86 = vector.shape_cast %85 : vector<1x8x16xf32> to vector<8x16xf32>
    %87 = vector.extract_strided_slice %79 {offsets = [3, 0, 0], sizes = [1, 8, 16], strides = [1, 1, 1]} : vector<4x8x16xf32> to vector<1x8x16xf32>
    %88 = vector.shape_cast %87 : vector<1x8x16xf32> to vector<8x16xf32>
    %89 = tpu.concatenate %86, %88 in 1 : vector<8x16xf32>, vector<8x16xf32> -> vector<8x32xf32>
    %90 = tpu.concatenate %84, %89 in 0 : vector<8x32xf32>, vector<8x32xf32> -> vector<16x32xf32>
    %c0_23 = arith.constant 0 : index
    %c0_24 = arith.constant 0 : index
    %c0_25 = arith.constant 0 : index
    %91 = vector.load %arg7[%c0_23, %c0_24, %c0_25] : memref<2x32x32xbf16, #tpu.memory_space<vmem>>, vector<1x32x32xbf16>
    %92 = vector.shape_cast %91 : vector<1x32x32xbf16> to vector<32x32xbf16>
    %93 = arith.truncf %90 : vector<16x32xf32> to vector<16x32xbf16>
    %cst_26 = arith.constant dense<0.000000e+00> : vector<16x32xf32>
    %94 = tpu.matmul %93, %92, %cst_26 {dimension_numbers = #tpu.dot_dimension_numbers<[1], [0], [0], [1], [0, 0, 1, 1], [], []>} : vector<16x32xbf16>, vector<32x32xbf16>, vector<16x32xf32> -> vector<16x32xf32>
    %c0_27 = arith.constant 0 : index
    %c0_28 = arith.constant 0 : index
    %c0_29 = arith.constant 0 : index
    %95 = vector.load %arg8[%c0_27, %c0_28, %c0_29] : memref<2x1x32xf32, #tpu.memory_space<vmem>>, vector<1x1x32xf32>
    %96 = vector.shape_cast %95 : vector<1x1x32xf32> to vector<1x32xf32>
    %97 = vector.broadcast %96 : vector<1x32xf32> to vector<16x32xf32>
    %98 = arith.addf %94, %97 : vector<16x32xf32>
    %99 = arith.addf %98, %24 : vector<16x32xf32>
    %c0_30 = arith.constant 0 : index
    %c0_31 = arith.constant 0 : index
    %c0_32 = arith.constant 0 : index
    %100 = vector.load %arg9[%c0_30, %c0_31, %c0_32] : memref<2x1x32xf32, #tpu.memory_space<vmem>>, vector<1x1x32xf32>
    %101 = vector.shape_cast %100 : vector<1x1x32xf32> to vector<1x32xf32>
    %c0_33 = arith.constant 0 : index
    %c0_34 = arith.constant 0 : index
    %c0_35 = arith.constant 0 : index
    %102 = vector.load %arg10[%c0_33, %c0_34, %c0_35] : memref<2x1x32xf32, #tpu.memory_space<vmem>>, vector<1x1x32xf32>
    %103 = vector.shape_cast %102 : vector<1x1x32xf32> to vector<1x32xf32>
    %cst_36 = arith.constant dense<0.000000e+00> : vector<16xf32>
    %104 = vector.multi_reduction <add>, %99, %cst_36 [1] : vector<16x32xf32> to vector<16xf32>
    %105 = vector.shape_cast %104 : vector<16xf32> to vector<16x1xf32>
    %cst_37 = arith.constant 3.200000e+01 : f32
    %106 = vector.broadcast %cst_37 : f32 to vector<16x1xf32>
    %107 = arith.divf %105, %106 : vector<16x1xf32>
    %108 = vector.broadcast %107 : vector<16x1xf32> to vector<16x32xf32>
    %109 = arith.subf %99, %108 : vector<16x32xf32>
    %110 = arith.mulf %109, %109 : vector<16x32xf32>
    %cst_38 = arith.constant dense<0.000000e+00> : vector<16xf32>
    %111 = vector.multi_reduction <add>, %110, %cst_38 [1] : vector<16x32xf32> to vector<16xf32>
    %112 = vector.shape_cast %111 : vector<16xf32> to vector<16x1xf32>
    %cst_39 = arith.constant 3.200000e+01 : f32
    %113 = vector.broadcast %cst_39 : f32 to vector<16x1xf32>
    %114 = arith.divf %112, %113 : vector<16x1xf32>
    %115 = vector.broadcast %107 : vector<16x1xf32> to vector<16x32xf32>
    %116 = arith.subf %99, %115 : vector<16x32xf32>
    %cst_40 = arith.constant 9.99999996E-13 : f32
    %117 = vector.broadcast %cst_40 : f32 to vector<16x1xf32>
    %118 = arith.addf %114, %117 : vector<16x1xf32>
    %119 = math.rsqrt %118 : vector<16x1xf32>
    %120 = vector.broadcast %119 : vector<16x1xf32> to vector<16x32xf32>
    %121 = arith.mulf %116, %120 : vector<16x32xf32>
    %122 = vector.broadcast %101 : vector<1x32xf32> to vector<16x32xf32>
    %123 = arith.mulf %121, %122 : vector<16x32xf32>
    %124 = vector.broadcast %103 : vector<1x32xf32> to vector<16x32xf32>
    %125 = arith.addf %123, %124 : vector<16x32xf32>
    %c0_41 = arith.constant 0 : index
    %c0_42 = arith.constant 0 : index
    %c0_43 = arith.constant 0 : index
    %126 = vector.load %arg11[%c0_41, %c0_42, %c0_43] : memref<2x32x64xbf16, #tpu.memory_space<vmem>>, vector<1x32x64xbf16>
    %127 = vector.shape_cast %126 : vector<1x32x64xbf16> to vector<32x64xbf16>
    %128 = arith.truncf %125 : vector<16x32xf32> to vector<16x32xbf16>
    %cst_44 = arith.constant dense<0.000000e+00> : vector<16x64xf32>
    %129 = tpu.matmul %128, %127, %cst_44 {dimension_numbers = #tpu.dot_dimension_numbers<[1], [0], [0], [1], [0, 0, 1, 1], [], []>} : vector<16x32xbf16>, vector<32x64xbf16>, vector<16x64xf32> -> vector<16x64xf32>
    %c0_45 = arith.constant 0 : index
    %c0_46 = arith.constant 0 : index
    %c0_47 = arith.constant 0 : index
    %130 = vector.load %arg12[%c0_45, %c0_46, %c0_47] : memref<2x1x64xf32, #tpu.memory_space<vmem>>, vector<1x1x64xf32>
    %131 = vector.shape_cast %130 : vector<1x1x64xf32> to vector<1x64xf32>
    %132 = vector.broadcast %131 : vector<1x64xf32> to vector<16x64xf32>
    %133 = arith.addf %129, %132 : vector<16x64xf32>
    %134 = arith.mulf %133, %133 : vector<16x64xf32>
    %135 = arith.mulf %133, %134 : vector<16x64xf32>
    %cst_48 = arith.constant 4.471500e-02 : f32
    %136 = vector.broadcast %cst_48 : f32 to vector<16x64xf32>
    %137 = arith.mulf %136, %135 : vector<16x64xf32>
    %138 = arith.addf %133, %137 : vector<16x64xf32>
    %cst_49 = arith.constant 0.797884583 : f32
    %139 = vector.broadcast %cst_49 : f32 to vector<16x64xf32>
    %140 = arith.mulf %139, %138 : vector<16x64xf32>
    %141 = math.tanh %140 : vector<16x64xf32>
    %cst_50 = arith.constant 1.000000e+00 : f32
    %142 = vector.broadcast %cst_50 : f32 to vector<16x64xf32>
    %143 = arith.addf %142, %141 : vector<16x64xf32>
    %cst_51 = arith.constant 5.000000e-01 : f32
    %144 = vector.broadcast %cst_51 : f32 to vector<16x64xf32>
    %145 = arith.mulf %144, %143 : vector<16x64xf32>
    %146 = arith.mulf %133, %145 : vector<16x64xf32>
    %c0_52 = arith.constant 0 : index
    %c0_53 = arith.constant 0 : index
    %c0_54 = arith.constant 0 : index
    %147 = vector.load %arg13[%c0_52, %c0_53, %c0_54] : memref<2x64x32xbf16, #tpu.memory_space<vmem>>, vector<1x64x32xbf16>
    %148 = vector.shape_cast %147 : vector<1x64x32xbf16> to vector<64x32xbf16>
    %149 = arith.truncf %146 : vector<16x64xf32> to vector<16x64xbf16>
    %cst_55 = arith.constant dense<0.000000e+00> : vector<16x32xf32>
    %150 = tpu.matmul %149, %148, %cst_55 {dimension_numbers = #tpu.dot_dimension_numbers<[1], [0], [0], [1], [0, 0, 1, 1], [], []>} : vector<16x64xbf16>, vector<64x32xbf16>, vector<16x32xf32> -> vector<16x32xf32>
    %c0_56 = arith.constant 0 : index
    %c0_57 = arith.constant 0 : index
    %c0_58 = arith.constant 0 : index
    %151 = vector.load %arg14[%c0_56, %c0_57, %c0_58] : memref<2x1x32xf32, #tpu.memory_space<vmem>>, vector<1x1x32xf32>
    %152 = vector.shape_cast %151 : vector<1x1x32xf32> to vector<1x32xf32>
    %153 = vector.broadcast %152 : vector<1x32xf32> to vector<16x32xf32>
    %154 = arith.addf %150, %153 : vector<16x32xf32>
    %155 = arith.addf %154, %125 : vector<16x32xf32>
    %c0_59 = arith.constant 0 : index
    %c0_60 = arith.constant 0 : index
    %c0_61 = arith.constant 0 : index
    %156 = vector.load %arg15[%c0_59, %c0_60, %c0_61] : memref<2x1x32xf32, #tpu.memory_space<vmem>>, vector<1x1x32xf32>
    %157 = vector.shape_cast %156 : vector<1x1x32xf32> to vector<1x32xf32>
    %c0_62 = arith.constant 0 : index
    %c0_63 = arith.constant 0 : index
    %c0_64 = arith.constant 0 : index
    %158 = vector.load %arg16[%c0_62, %c0_63, %c0_64] : memref<2x1x32xf32, #tpu.memory_space<vmem>>, vector<1x1x32xf32>
    %159 = vector.shape_cast %158 : vector<1x1x32xf32> to vector<1x32xf32>
    %cst_65 = arith.constant dense<0.000000e+00> : vector<16xf32>
    %160 = vector.multi_reduction <add>, %155, %cst_65 [1] : vector<16x32xf32> to vector<16xf32>
    %161 = vector.shape_cast %160 : vector<16xf32> to vector<16x1xf32>
    %cst_66 = arith.constant 3.200000e+01 : f32
    %162 = vector.broadcast %cst_66 : f32 to vector<16x1xf32>
    %163 = arith.divf %161, %162 : vector<16x1xf32>
    %164 = vector.broadcast %163 : vector<16x1xf32> to vector<16x32xf32>
    %165 = arith.subf %155, %164 : vector<16x32xf32>
    %166 = arith.mulf %165, %165 : vector<16x32xf32>
    %cst_67 = arith.constant dense<0.000000e+00> : vector<16xf32>
    %167 = vector.multi_reduction <add>, %166, %cst_67 [1] : vector<16x32xf32> to vector<16xf32>
    %168 = vector.shape_cast %167 : vector<16xf32> to vector<16x1xf32>
    %cst_68 = arith.constant 3.200000e+01 : f32
    %169 = vector.broadcast %cst_68 : f32 to vector<16x1xf32>
    %170 = arith.divf %168, %169 : vector<16x1xf32>
    %171 = vector.broadcast %163 : vector<16x1xf32> to vector<16x32xf32>
    %172 = arith.subf %155, %171 : vector<16x32xf32>
    %cst_69 = arith.constant 9.99999996E-13 : f32
    %173 = vector.broadcast %cst_69 : f32 to vector<16x1xf32>
    %174 = arith.addf %170, %173 : vector<16x1xf32>
    %175 = math.rsqrt %174 : vector<16x1xf32>
    %176 = vector.broadcast %175 : vector<16x1xf32> to vector<16x32xf32>
    %177 = arith.mulf %172, %176 : vector<16x32xf32>
    %178 = vector.broadcast %157 : vector<1x32xf32> to vector<16x32xf32>
    %179 = arith.mulf %177, %178 : vector<16x32xf32>
    %180 = vector.broadcast %159 : vector<1x32xf32> to vector<16x32xf32>
    %181 = arith.addf %179, %180 : vector<16x32xf32>
    %c1 = arith.constant 1 : index
    %c0_70 = arith.constant 0 : index
    %c0_71 = arith.constant 0 : index
    %182 = vector.load %arg5[%c1, %c0_70, %c0_71] : memref<2x32x96xbf16, #tpu.memory_space<vmem>>, vector<1x32x96xbf16>
    %183 = vector.shape_cast %182 : vector<1x32x96xbf16> to vector<32x96xbf16>
    %184 = arith.truncf %181 : vector<16x32xf32> to vector<16x32xbf16>
    %cst_72 = arith.constant dense<0.000000e+00> : vector<16x96xf32>
    %185 = tpu.matmul %184, %183, %cst_72 {dimension_numbers = #tpu.dot_dimension_numbers<[1], [0], [0], [1], [0, 0, 1, 1], [], []>} : vector<16x32xbf16>, vector<32x96xbf16>, vector<16x96xf32> -> vector<16x96xf32>
    %c1_73 = arith.constant 1 : index
    %c0_74 = arith.constant 0 : index
    %c0_75 = arith.constant 0 : index
    %186 = vector.load %arg6[%c1_73, %c0_74, %c0_75] : memref<2x1x96xf32, #tpu.memory_space<vmem>>, vector<1x1x96xf32>
    %187 = vector.shape_cast %186 : vector<1x1x96xf32> to vector<1x96xf32>
    %188 = vector.broadcast %187 : vector<1x96xf32> to vector<16x96xf32>
    %189 = arith.addf %185, %188 : vector<16x96xf32>
    %190 = vector.extract_strided_slice %189 {offsets = [0, 0], sizes = [16, 32], strides = [1, 1]} : vector<16x96xf32> to vector<16x32xf32>
    %191 = vector.extract_strided_slice %189 {offsets = [0, 32], sizes = [16, 32], strides = [1, 1]} : vector<16x96xf32> to vector<16x32xf32>
    %192 = vector.extract_strided_slice %189 {offsets = [0, 64], sizes = [16, 32], strides = [1, 1]} : vector<16x96xf32> to vector<16x32xf32>
    %193 = vector.extract_strided_slice %190 {offsets = [0, 0], sizes = [8, 16], strides = [1, 1]} : vector<16x32xf32> to vector<8x16xf32>
    %194 = vector.extract_strided_slice %190 {offsets = [0, 16], sizes = [8, 16], strides = [1, 1]} : vector<16x32xf32> to vector<8x16xf32>
    %195 = vector.extract_strided_slice %190 {offsets = [8, 0], sizes = [8, 16], strides = [1, 1]} : vector<16x32xf32> to vector<8x16xf32>
    %196 = vector.extract_strided_slice %190 {offsets = [8, 16], sizes = [8, 16], strides = [1, 1]} : vector<16x32xf32> to vector<8x16xf32>
    %197 = vector.shape_cast %193 : vector<8x16xf32> to vector<1x8x16xf32>
    %198 = vector.shape_cast %194 : vector<8x16xf32> to vector<1x8x16xf32>
    %199 = vector.shape_cast %195 : vector<8x16xf32> to vector<1x8x16xf32>
    %200 = vector.shape_cast %196 : vector<8x16xf32> to vector<1x8x16xf32>
    %201 = tpu.concatenate %197, %198, %199, %200 in 0 : vector<1x8x16xf32>, vector<1x8x16xf32>, vector<1x8x16xf32>, vector<1x8x16xf32> -> vector<4x8x16xf32>
    %202 = arith.truncf %201 : vector<4x8x16xf32> to vector<4x8x16xbf16>
    %203 = vector.extract_strided_slice %191 {offsets = [0, 0], sizes = [8, 16], strides = [1, 1]} : vector<16x32xf32> to vector<8x16xf32>
    %204 = vector.extract_strided_slice %191 {offsets = [0, 16], sizes = [8, 16], strides = [1, 1]} : vector<16x32xf32> to vector<8x16xf32>
    %205 = vector.extract_strided_slice %191 {offsets = [8, 0], sizes = [8, 16], strides = [1, 1]} : vector<16x32xf32> to vector<8x16xf32>
    %206 = vector.extract_strided_slice %191 {offsets = [8, 16], sizes = [8, 16], strides = [1, 1]} : vector<16x32xf32> to vector<8x16xf32>
    %207 = vector.shape_cast %203 : vector<8x16xf32> to vector<1x8x16xf32>
    %208 = vector.shape_cast %204 : vector<8x16xf32> to vector<1x8x16xf32>
    %209 = vector.shape_cast %205 : vector<8x16xf32> to vector<1x8x16xf32>
    %210 = vector.shape_cast %206 : vector<8x16xf32> to vector<1x8x16xf32>
    %211 = tpu.concatenate %207, %208, %209, %210 in 0 : vector<1x8x16xf32>, vector<1x8x16xf32>, vector<1x8x16xf32>, vector<1x8x16xf32> -> vector<4x8x16xf32>
    %212 = arith.truncf %211 : vector<4x8x16xf32> to vector<4x8x16xbf16>
    %213 = vector.extract_strided_slice %192 {offsets = [0, 0], sizes = [8, 16], strides = [1, 1]} : vector<16x32xf32> to vector<8x16xf32>
    %214 = vector.extract_strided_slice %192 {offsets = [0, 16], sizes = [8, 16], strides = [1, 1]} : vector<16x32xf32> to vector<8x16xf32>
    %215 = vector.extract_strided_slice %192 {offsets = [8, 0], sizes = [8, 16], strides = [1, 1]} : vector<16x32xf32> to vector<8x16xf32>
    %216 = vector.extract_strided_slice %192 {offsets = [8, 16], sizes = [8, 16], strides = [1, 1]} : vector<16x32xf32> to vector<8x16xf32>
    %217 = vector.shape_cast %213 : vector<8x16xf32> to vector<1x8x16xf32>
    %218 = vector.shape_cast %214 : vector<8x16xf32> to vector<1x8x16xf32>
    %219 = vector.shape_cast %215 : vector<8x16xf32> to vector<1x8x16xf32>
    %220 = vector.shape_cast %216 : vector<8x16xf32> to vector<1x8x16xf32>
    %221 = tpu.concatenate %217, %218, %219, %220 in 0 : vector<1x8x16xf32>, vector<1x8x16xf32>, vector<1x8x16xf32>, vector<1x8x16xf32> -> vector<4x8x16xf32>
    "tpu.trace_start"() <{level = 10 : i32, message = "bqd,bkd->bqk"}> : () -> ()
    %cst_76 = arith.constant dense<0.000000e+00> : vector<4x8x8xf32>
    %222 = tpu.matmul %202, %212, %cst_76 {dimension_numbers = #tpu.dot_dimension_numbers<[2], [2], [1], [1], [0, 0, 0, 1, 1, 1], [0], [0]>} : vector<4x8x16xbf16>, vector<4x8x16xbf16>, vector<4x8x8xf32> -> vector<4x8x8xf32>
    "tpu.trace_stop"() : () -> ()
    %223 = vector.broadcast %25 : vector<4x1x8xf32> to vector<4x8x8xf32>
    %224 = arith.addf %222, %223 : vector<4x8x8xf32>
    %cst_77 = arith.constant dense<0xFF800000> : vector<4x8xf32>
    %225 = vector.multi_reduction <maximumf>, %224, %cst_77 [2] : vector<4x8x8xf32> to vector<4x8xf32>
    %226 = vector.shape_cast %225 : vector<4x8xf32> to vector<4x8x1xf32>
    %227 = vector.broadcast %226 : vector<4x8x1xf32> to vector<4x8x8xf32>
    %228 = arith.subf %224, %227 : vector<4x8x8xf32>
    %229 = math.exp %228 : vector<4x8x8xf32>
    %cst_78 = arith.constant dense<0.000000e+00> : vector<4x8xf32>
    %230 = vector.multi_reduction <add>, %229, %cst_78 [2] : vector<4x8x8xf32> to vector<4x8xf32>
    %231 = vector.shape_cast %230 : vector<4x8xf32> to vector<4x8x1xf32>
    %232 = tpu.reciprocal %231 {approx = true} : vector<4x8x1xf32> -> vector<4x8x1xf32>
    %233 = vector.broadcast %232 : vector<4x8x1xf32> to vector<4x8x8xf32>
    %234 = arith.mulf %229, %233 : vector<4x8x8xf32>
    "tpu.trace_start"() <{level = 10 : i32, message = "bqk,bkd->bqd"}> : () -> ()
    %cst_79 = arith.constant dense<0.000000e+00> : vector<4x8x16xf32>
    %235 = tpu.matmul %234, %221, %cst_79 {dimension_numbers = #tpu.dot_dimension_numbers<[2], [1], [1], [2], [0, 0, 0, 1, 1, 2], [0], [0]>} : vector<4x8x8xf32>, vector<4x8x16xf32>, vector<4x8x16xf32> -> vector<4x8x16xf32>
    "tpu.trace_stop"() : () -> ()
    %236 = vector.extract_strided_slice %235 {offsets = [0, 0, 0], sizes = [1, 8, 16], strides = [1, 1, 1]} : vector<4x8x16xf32> to vector<1x8x16xf32>
    %237 = vector.shape_cast %236 : vector<1x8x16xf32> to vector<8x16xf32>
    %238 = vector.extract_strided_slice %235 {offsets = [1, 0, 0], sizes = [1, 8, 16], strides = [1, 1, 1]} : vector<4x8x16xf32> to vector<1x8x16xf32>
    %239 = vector.shape_cast %238 : vector<1x8x16xf32> to vector<8x16xf32>
    %240 = tpu.concatenate %237, %239 in 1 : vector<8x16xf32>, vector<8x16xf32> -> vector<8x32xf32>
    %241 = vector.extract_strided_slice %235 {offsets = [2, 0, 0], sizes = [1, 8, 16], strides = [1, 1, 1]} : vector<4x8x16xf32> to vector<1x8x16xf32>
    %242 = vector.shape_cast %241 : vector<1x8x16xf32> to vector<8x16xf32>
    %243 = vector.extract_strided_slice %235 {offsets = [3, 0, 0], sizes = [1, 8, 16], strides = [1, 1, 1]} : vector<4x8x16xf32> to vector<1x8x16xf32>
    %244 = vector.shape_cast %243 : vector<1x8x16xf32> to vector<8x16xf32>
    %245 = tpu.concatenate %242, %244 in 1 : vector<8x16xf32>, vector<8x16xf32> -> vector<8x32xf32>
    %246 = tpu.concatenate %240, %245 in 0 : vector<8x32xf32>, vector<8x32xf32> -> vector<16x32xf32>
    %c1_80 = arith.constant 1 : index
    %c0_81 = arith.constant 0 : index
    %c0_82 = arith.constant 0 : index
    %247 = vector.load %arg7[%c1_80, %c0_81, %c0_82] : memref<2x32x32xbf16, #tpu.memory_space<vmem>>, vector<1x32x32xbf16>
    %248 = vector.shape_cast %247 : vector<1x32x32xbf16> to vector<32x32xbf16>
    %249 = arith.truncf %246 : vector<16x32xf32> to vector<16x32xbf16>
    %cst_83 = arith.constant dense<0.000000e+00> : vector<16x32xf32>
    %250 = tpu.matmul %249, %248, %cst_83 {dimension_numbers = #tpu.dot_dimension_numbers<[1], [0], [0], [1], [0, 0, 1, 1], [], []>} : vector<16x32xbf16>, vector<32x32xbf16>, vector<16x32xf32> -> vector<16x32xf32>
    %c1_84 = arith.constant 1 : index
    %c0_85 = arith.constant 0 : index
    %c0_86 = arith.constant 0 : index
    %251 = vector.load %arg8[%c1_84, %c0_85, %c0_86] : memref<2x1x32xf32, #tpu.memory_space<vmem>>, vector<1x1x32xf32>
    %252 = vector.shape_cast %251 : vector<1x1x32xf32> to vector<1x32xf32>
    %253 = vector.broadcast %252 : vector<1x32xf32> to vector<16x32xf32>
    %254 = arith.addf %250, %253 : vector<16x32xf32>
    %255 = arith.addf %254, %181 : vector<16x32xf32>
    %c1_87 = arith.constant 1 : index
    %c0_88 = arith.constant 0 : index
    %c0_89 = arith.constant 0 : index
    %256 = vector.load %arg9[%c1_87, %c0_88, %c0_89] : memref<2x1x32xf32, #tpu.memory_space<vmem>>, vector<1x1x32xf32>
    %257 = vector.shape_cast %256 : vector<1x1x32xf32> to vector<1x32xf32>
    %c1_90 = arith.constant 1 : index
    %c0_91 = arith.constant 0 : index
    %c0_92 = arith.constant 0 : index
    %258 = vector.load %arg10[%c1_90, %c0_91, %c0_92] : memref<2x1x32xf32, #tpu.memory_space<vmem>>, vector<1x1x32xf32>
    %259 = vector.shape_cast %258 : vector<1x1x32xf32> to vector<1x32xf32>
    %cst_93 = arith.constant dense<0.000000e+00> : vector<16xf32>
    %260 = vector.multi_reduction <add>, %255, %cst_93 [1] : vector<16x32xf32> to vector<16xf32>
    %261 = vector.shape_cast %260 : vector<16xf32> to vector<16x1xf32>
    %cst_94 = arith.constant 3.200000e+01 : f32
    %262 = vector.broadcast %cst_94 : f32 to vector<16x1xf32>
    %263 = arith.divf %261, %262 : vector<16x1xf32>
    %264 = vector.broadcast %263 : vector<16x1xf32> to vector<16x32xf32>
    %265 = arith.subf %255, %264 : vector<16x32xf32>
    %266 = arith.mulf %265, %265 : vector<16x32xf32>
    %cst_95 = arith.constant dense<0.000000e+00> : vector<16xf32>
    %267 = vector.multi_reduction <add>, %266, %cst_95 [1] : vector<16x32xf32> to vector<16xf32>
    %268 = vector.shape_cast %267 : vector<16xf32> to vector<16x1xf32>
    %cst_96 = arith.constant 3.200000e+01 : f32
    %269 = vector.broadcast %cst_96 : f32 to vector<16x1xf32>
    %270 = arith.divf %268, %269 : vector<16x1xf32>
    %271 = vector.broadcast %263 : vector<16x1xf32> to vector<16x32xf32>
    %272 = arith.subf %255, %271 : vector<16x32xf32>
    %cst_97 = arith.constant 9.99999996E-13 : f32
    %273 = vector.broadcast %cst_97 : f32 to vector<16x1xf32>
    %274 = arith.addf %270, %273 : vector<16x1xf32>
    %275 = math.rsqrt %274 : vector<16x1xf32>
    %276 = vector.broadcast %275 : vector<16x1xf32> to vector<16x32xf32>
    %277 = arith.mulf %272, %276 : vector<16x32xf32>
    %278 = vector.broadcast %257 : vector<1x32xf32> to vector<16x32xf32>
    %279 = arith.mulf %277, %278 : vector<16x32xf32>
    %280 = vector.broadcast %259 : vector<1x32xf32> to vector<16x32xf32>
    %281 = arith.addf %279, %280 : vector<16x32xf32>
    %c1_98 = arith.constant 1 : index
    %c0_99 = arith.constant 0 : index
    %c0_100 = arith.constant 0 : index
    %282 = vector.load %arg11[%c1_98, %c0_99, %c0_100] : memref<2x32x64xbf16, #tpu.memory_space<vmem>>, vector<1x32x64xbf16>
    %283 = vector.shape_cast %282 : vector<1x32x64xbf16> to vector<32x64xbf16>
    %284 = arith.truncf %281 : vector<16x32xf32> to vector<16x32xbf16>
    %cst_101 = arith.constant dense<0.000000e+00> : vector<16x64xf32>
    %285 = tpu.matmul %284, %283, %cst_101 {dimension_numbers = #tpu.dot_dimension_numbers<[1], [0], [0], [1], [0, 0, 1, 1], [], []>} : vector<16x32xbf16>, vector<32x64xbf16>, vector<16x64xf32> -> vector<16x64xf32>
    %c1_102 = arith.constant 1 : index
    %c0_103 = arith.constant 0 : index
    %c0_104 = arith.constant 0 : index
    %286 = vector.load %arg12[%c1_102, %c0_103, %c0_104] : memref<2x1x64xf32, #tpu.memory_space<vmem>>, vector<1x1x64xf32>
    %287 = vector.shape_cast %286 : vector<1x1x64xf32> to vector<1x64xf32>
    %288 = vector.broadcast %287 : vector<1x64xf32> to vector<16x64xf32>
    %289 = arith.addf %285, %288 : vector<16x64xf32>
    %290 = arith.mulf %289, %289 : vector<16x64xf32>
    %291 = arith.mulf %289, %290 : vector<16x64xf32>
    %cst_105 = arith.constant 4.471500e-02 : f32
    %292 = vector.broadcast %cst_105 : f32 to vector<16x64xf32>
    %293 = arith.mulf %292, %291 : vector<16x64xf32>
    %294 = arith.addf %289, %293 : vector<16x64xf32>
    %cst_106 = arith.constant 0.797884583 : f32
    %295 = vector.broadcast %cst_106 : f32 to vector<16x64xf32>
    %296 = arith.mulf %295, %294 : vector<16x64xf32>
    %297 = math.tanh %296 : vector<16x64xf32>
    %cst_107 = arith.constant 1.000000e+00 : f32
    %298 = vector.broadcast %cst_107 : f32 to vector<16x64xf32>
    %299 = arith.addf %298, %297 : vector<16x64xf32>
    %cst_108 = arith.constant 5.000000e-01 : f32
    %300 = vector.broadcast %cst_108 : f32 to vector<16x64xf32>
    %301 = arith.mulf %300, %299 : vector<16x64xf32>
    %302 = arith.mulf %289, %301 : vector<16x64xf32>
    %c1_109 = arith.constant 1 : index
    %c0_110 = arith.constant 0 : index
    %c0_111 = arith.constant 0 : index
    %303 = vector.load %arg13[%c1_109, %c0_110, %c0_111] : memref<2x64x32xbf16, #tpu.memory_space<vmem>>, vector<1x64x32xbf16>
    %304 = vector.shape_cast %303 : vector<1x64x32xbf16> to vector<64x32xbf16>
    %305 = arith.truncf %302 : vector<16x64xf32> to vector<16x64xbf16>
    %cst_112 = arith.constant dense<0.000000e+00> : vector<16x32xf32>
    %306 = tpu.matmul %305, %304, %cst_112 {dimension_numbers = #tpu.dot_dimension_numbers<[1], [0], [0], [1], [0, 0, 1, 1], [], []>} : vector<16x64xbf16>, vector<64x32xbf16>, vector<16x32xf32> -> vector<16x32xf32>
    %c1_113 = arith.constant 1 : index
    %c0_114 = arith.constant 0 : index
    %c0_115 = arith.constant 0 : index
    %307 = vector.load %arg14[%c1_113, %c0_114, %c0_115] : memref<2x1x32xf32, #tpu.memory_space<vmem>>, vector<1x1x32xf32>
    %308 = vector.shape_cast %307 : vector<1x1x32xf32> to vector<1x32xf32>
    %309 = vector.broadcast %308 : vector<1x32xf32> to vector<16x32xf32>
    %310 = arith.addf %306, %309 : vector<16x32xf32>
    %311 = arith.addf %310, %281 : vector<16x32xf32>
    %c1_116 = arith.constant 1 : index
    %c0_117 = arith.constant 0 : index
    %c0_118 = arith.constant 0 : index
    %312 = vector.load %arg15[%c1_116, %c0_117, %c0_118] : memref<2x1x32xf32, #tpu.memory_space<vmem>>, vector<1x1x32xf32>
    %313 = vector.shape_cast %312 : vector<1x1x32xf32> to vector<1x32xf32>
    %c1_119 = arith.constant 1 : index
    %c0_120 = arith.constant 0 : index
    %c0_121 = arith.constant 0 : index
    %314 = vector.load %arg16[%c1_119, %c0_120, %c0_121] : memref<2x1x32xf32, #tpu.memory_space<vmem>>, vector<1x1x32xf32>
    %315 = vector.shape_cast %314 : vector<1x1x32xf32> to vector<1x32xf32>
    %cst_122 = arith.constant dense<0.000000e+00> : vector<16xf32>
    %316 = vector.multi_reduction <add>, %311, %cst_122 [1] : vector<16x32xf32> to vector<16xf32>
    %317 = vector.shape_cast %316 : vector<16xf32> to vector<16x1xf32>
    %cst_123 = arith.constant 3.200000e+01 : f32
    %318 = vector.broadcast %cst_123 : f32 to vector<16x1xf32>
    %319 = arith.divf %317, %318 : vector<16x1xf32>
    %320 = vector.broadcast %319 : vector<16x1xf32> to vector<16x32xf32>
    %321 = arith.subf %311, %320 : vector<16x32xf32>
    %322 = arith.mulf %321, %321 : vector<16x32xf32>
    %cst_124 = arith.constant dense<0.000000e+00> : vector<16xf32>
    %323 = vector.multi_reduction <add>, %322, %cst_124 [1] : vector<16x32xf32> to vector<16xf32>
    %324 = vector.shape_cast %323 : vector<16xf32> to vector<16x1xf32>
    %cst_125 = arith.constant 3.200000e+01 : f32
    %325 = vector.broadcast %cst_125 : f32 to vector<16x1xf32>
    %326 = arith.divf %324, %325 : vector<16x1xf32>
    %327 = vector.broadcast %319 : vector<16x1xf32> to vector<16x32xf32>
    %328 = arith.subf %311, %327 : vector<16x32xf32>
    %cst_126 = arith.constant 9.99999996E-13 : f32
    %329 = vector.broadcast %cst_126 : f32 to vector<16x1xf32>
    %330 = arith.addf %326, %329 : vector<16x1xf32>
    %331 = math.rsqrt %330 : vector<16x1xf32>
    %332 = vector.broadcast %331 : vector<16x1xf32> to vector<16x32xf32>
    %333 = arith.mulf %328, %332 : vector<16x32xf32>
    %334 = vector.broadcast %313 : vector<1x32xf32> to vector<16x32xf32>
    %335 = arith.mulf %333, %334 : vector<16x32xf32>
    %336 = vector.broadcast %315 : vector<1x32xf32> to vector<16x32xf32>
    %337 = arith.addf %335, %336 : vector<16x32xf32>
    %338 = vector.extract_strided_slice %337 {offsets = [0, 0], sizes = [1, 32], strides = [1, 1]} : vector<16x32xf32> to vector<1x32xf32>
    %339 = vector.extract_strided_slice %337 {offsets = [8, 0], sizes = [1, 32], strides = [1, 1]} : vector<16x32xf32> to vector<1x32xf32>
    %cst_127 = arith.constant 0.000000e+00 : f32
    %340 = vector.broadcast %cst_127 : f32 to vector<6x32xf32>
    %341 = tpu.concatenate %338, %339, %340 in 0 : vector<1x32xf32>, vector<1x32xf32>, vector<6x32xf32> -> vector<8x32xf32>
    %c0_128 = arith.constant 0 : index
    %c0_129 = arith.constant 0 : index
    %342 = vector.load %arg17[%c0_128, %c0_129] : memref<32x16xbf16, #tpu.memory_space<vmem>>, vector<32x16xbf16>
    %343 = arith.truncf %341 : vector<8x32xf32> to vector<8x32xbf16>
    %cst_130 = arith.constant dense<0.000000e+00> : vector<8x16xf32>
    %344 = tpu.matmul %343, %342, %cst_130 {dimension_numbers = #tpu.dot_dimension_numbers<[1], [0], [0], [1], [0, 0, 1, 1], [], []>} : vector<8x32xbf16>, vector<32x16xbf16>, vector<8x16xf32> -> vector<8x16xf32>
    %c0_131 = arith.constant 0 : index
    %c0_132 = arith.constant 0 : index
    %345 = vector.load %arg18[%c0_131, %c0_132] : memref<1x16xf32, #tpu.memory_space<vmem>>, vector<1x16xf32>
    %346 = vector.broadcast %345 : vector<1x16xf32> to vector<8x16xf32>
    %347 = arith.addf %344, %346 : vector<8x16xf32>
    %cst_133 = arith.constant 0.000000e+00 : f32
    %348 = vector.broadcast %cst_133 : f32 to vector<8x16xf32>
    %349 = arith.maximumf %347, %348 : vector<8x16xf32>
    %c0_134 = arith.constant 0 : index
    %c0_135 = arith.constant 0 : index
    %350 = vector.load %arg19[%c0_134, %c0_135] : memref<16x128xbf16, #tpu.memory_space<vmem>>, vector<16x128xbf16>
    %351 = arith.truncf %349 : vector<8x16xf32> to vector<8x16xbf16>
    %cst_136 = arith.constant dense<0.000000e+00> : vector<8x128xf32>
    %352 = tpu.matmul %351, %350, %cst_136 {dimension_numbers = #tpu.dot_dimension_numbers<[1], [0], [0], [1], [0, 0, 1, 1], [], []>} : vector<8x16xbf16>, vector<16x128xbf16>, vector<8x128xf32> -> vector<8x128xf32>
    %c0_137 = arith.constant 0 : index
    %c0_138 = arith.constant 0 : index
    %353 = vector.load %arg20[%c0_137, %c0_138] : memref<1x128xf32, #tpu.memory_space<vmem>>, vector<1x128xf32>
    %354 = vector.broadcast %353 : vector<1x128xf32> to vector<8x128xf32>
    %355 = arith.addf %352, %354 : vector<8x128xf32>
    %c0_139 = arith.constant 0 : index
    %c0_140 = arith.constant 0 : index
    %356 = vector.load %arg21[%c0_139, %c0_140] : memref<8x128xf32, #tpu.memory_space<vmem>>, vector<8x128xf32>
    tpu.vector_store %arg21[%c0_139, %c0_140], %355 {strides = array<i32>} : memref<8x128xf32, #tpu.memory_space<vmem>>, vector<8x128xf32>,
    return
  }
  func.func @transform_0(%arg0: i32) -> (i32, i32) {
    %c0_i32 = arith.constant 0 : i32
    %c0_i32_0 = arith.constant 0 : i32
    %c0_i32_1 = arith.constant 0 : i32
    return %c0_i32, %c0_i32_0 : i32, i32
  }
  func.func @transform_1(%arg0: i32) -> (i32, i32, i32) {
    %c0_i32 = arith.constant 0 : i32
    %c0_i32_0 = arith.constant 0 : i32
    %c0_i32_1 = arith.constant 0 : i32
    %c0_i32_2 = arith.constant 0 : i32
    return %c0_i32, %c0_i32_0, %c0_i32_1 : i32, i32, i32
  }
  func.func @transform_2(%arg0: i32) -> (i32, i32) {
    %c0_i32 = arith.constant 0 : i32
    %c0_i32_0 = arith.constant 0 : i32
    %c0_i32_1 = arith.constant 0 : i32
    return %c0_i32, %c0_i32_0 : i32, i32
  }
  func.func @transform_3(%arg0: i32) -> (i32, i32) {
    %c0_i32 = arith.constant 0 : i32
    %c0_i32_0 = arith.constant 0 : i32
    %c0_i32_1 = arith.constant 0 : i32
    return %c0_i32, %c0_i32_0 : i32, i32
  }
  func.func @transform_4(%arg0: i32) -> (i32, i32, i32) {
    %c0_i32 = arith.constant 0 : i32
    %c0_i32_0 = arith.constant 0 : i32
    %c0_i32_1 = arith.constant 0 : i32
    %c0_i32_2 = arith.constant 0 : i32
    return %c0_i32, %c0_i32_0, %c0_i32_1 : i32, i32, i32
  }
  func.func @transform_5(%arg0: i32) -> (i32, i32, i32) {
    %c0_i32 = arith.constant 0 : i32
    %c0_i32_0 = arith.constant 0 : i32
    %c0_i32_1 = arith.constant 0 : i32
    %c0_i32_2 = arith.constant 0 : i32
    return %c0_i32, %c0_i32_0, %c0_i32_1 : i32, i32, i32
  }
  func.func @transform_6(%arg0: i32) -> (i32, i32, i32) {
    %c0_i32 = arith.constant 0 : i32
    %c0_i32_0 = arith.constant 0 : i32
    %c0_i32_1 = arith.constant 0 : i32
    %c0_i32_2 = arith.constant 0 : i32
    return %c0_i32, %c0_i32_0, %c0_i32_1 : i32, i32, i32
  }
  func.func @transform_7(%arg0: i32) -> (i32, i32, i32) {
    %c0_i32 = arith.constant 0 : i32
    %c0_i32_0 = arith.constant 0 : i32
    %c0_i32_1 = arith.constant 0 : i32
    %c0_i32_2 = arith.constant 0 : i32
    return %c0_i32, %c0_i32_0, %c0_i32_1 : i32, i32, i32
  }
  func.func @transform_8(%arg0: i32) -> (i32, i32, i32) {
    %c0_i32 = arith.constant 0 : i32
    %c0_i32_0 = arith.constant 0 : i32
    %c0_i32_1 = arith.constant 0 : i32
    %c0_i32_2 = arith.constant 0 : i32
    return %c0_i32, %c0_i32_0, %c0_i32_1 : i32, i32, i32
  }
  func.func @transform_9(%arg0: i32) -> (i32, i32, i32) {
    %c0_i32 = arith.constant 0 : i32
    %c0_i32_0 = arith.constant 0 : i32
    %c0_i32_1 = arith.constant 0 : i32
    %c0_i32_2 = arith.constant 0 : i32
    return %c0_i32, %c0_i32_0, %c0_i32_1 : i32, i32, i32
  }
  func.func @transform_10(%arg0: i32) -> (i32, i32, i32) {
    %c0_i32 = arith.constant 0 : i32
    %c0_i32_0 = arith.constant 0 : i32
    %c0_i32_1 = arith.constant 0 : i32
    %c0_i32_2 = arith.constant 0 : i32
    return %c0_i32, %c0_i32_0, %c0_i32_1 : i32, i32, i32
  }
  func.func @transform_11(%arg0: i32) -> (i32, i32, i32) {
    %c0_i32 = arith.constant 0 : i32
    %c0_i32_0 = arith.constant 0 : i32
    %c0_i32_1 = arith.constant 0 : i32
    %c0_i32_2 = arith.constant 0 : i32
    return %c0_i32, %c0_i32_0, %c0_i32_1 : i32, i32, i32
  }
  func.func @transform_12(%arg0: i32) -> (i32, i32, i32) {
    %c0_i32 = arith.constant 0 : i32
    %c0_i32_0 = arith.constant 0 : i32
    %c0_i32_1 = arith.constant 0 : i32
    %c0_i32_2 = arith.constant 0 : i32
    return %c0_i32, %c0_i32_0, %c0_i32_1 : i32, i32, i32
  }
  func.func @transform_13(%arg0: i32) -> (i32, i32, i32) {
    %c0_i32 = arith.constant 0 : i32
    %c0_i32_0 = arith.constant 0 : i32
    %c0_i32_1 = arith.constant 0 : i32
    %c0_i32_2 = arith.constant 0 : i32
    return %c0_i32, %c0_i32_0, %c0_i32_1 : i32, i32, i32
  }
  func.func @transform_14(%arg0: i32) -> (i32, i32, i32) {
    %c0_i32 = arith.constant 0 : i32
    %c0_i32_0 = arith.constant 0 : i32
    %c0_i32_1 = arith.constant 0 : i32
    %c0_i32_2 = arith.constant 0 : i32
    return %c0_i32, %c0_i32_0, %c0_i32_1 : i32, i32, i32
  }
  func.func @transform_15(%arg0: i32) -> (i32, i32, i32) {
    %c0_i32 = arith.constant 0 : i32
    %c0_i32_0 = arith.constant 0 : i32
    %c0_i32_1 = arith.constant 0 : i32
    %c0_i32_2 = arith.constant 0 : i32
    return %c0_i32, %c0_i32_0, %c0_i32_1 : i32, i32, i32
  }
  func.func @transform_16(%arg0: i32) -> (i32, i32) {
    %c0_i32 = arith.constant 0 : i32
    %c0_i32_0 = arith.constant 0 : i32
    %c0_i32_1 = arith.constant 0 : i32
    return %c0_i32, %c0_i32_0 : i32, i32
  }
  func.func @transform_17(%arg0: i32) -> (i32, i32) {
    %c0_i32 = arith.constant 0 : i32
    %c0_i32_0 = arith.constant 0 : i32
    %c0_i32_1 = arith.constant 0 : i32
    return %c0_i32, %c0_i32_0 : i32, i32
  }
  func.func @transform_18(%arg0: i32) -> (i32, i32) {
    %c0_i32 = arith.constant 0 : i32
    %c0_i32_0 = arith.constant 0 : i32
    %c0_i32_1 = arith.constant 0 : i32
    return %c0_i32, %c0_i32_0 : i32, i32
  }
  func.func @transform_19(%arg0: i32) -> (i32, i32) {
    %c0_i32 = arith.constant 0 : i32
    %c0_i32_0 = arith.constant 0 : i32
    %c0_i32_1 = arith.constant 0 : i32
    return %c0_i32, %c0_i32_0 : i32, i32
  }
  func.func @transform_20(%arg0: i32) -> (i32, i32) {
    %c0_i32 = arith.constant 0 : i32
    %c0_i32_0 = arith.constant 0 : i32
    %c0_i32_1 = arith.constant 0 : i32
    return %c0_i32, %c0_i32_0 : i32, i32
  }
}

</mosaic_0001>

<bundles_post_ra>
// kernel: tpu_custom_call.1
= control target key start
LH: loop header
LB: loop body
LE: loop exit
PB: predicated region body
PF: predicated region fallthrough
CT: control target
= control target key end

     0   :  { %s3560_s0 = inlined_call_operand.vmem [shape: f32[16,32], index: 0, kind: input, shape index: {}]   ;;  %s3561_s1 = inlined_call_operand.hbm [shape: f32[4,1,8], index: 1, kind: input, shape index: {}]   ;;  %s3562_s2 = inlined_call_operand.vmem [shape: f32[1,32], index: 2, kind: input, shape index: {}]   ;;  %s3563_s3 = inlined_call_operand.hbm [shape: f32[1,32], index: 3, kind: input, shape index: {}]   ;;  %s3564_s4 = inlined_call_operand.vmem [shape: bf16[2,32,96], index: 4, kind: input, shape index: {}]   ;;  %s3565_s5 = inlined_call_operand.hbm [shape: f32[2,1,96], index: 5, kind: input, shape index: {}]   ;;  %s3566_s6 = inlined_call_operand.vmem [shape: bf16[2,32,32], index: 6, kind: input, shape index: {}]   ;;  %s3567_s7 = inlined_call_operand.hbm [shape: f32[2,1,32], index: 7, kind: input, shape index: {}]   ;;  %s3568_s8 = inlined_call_operand.hbm [shape: f32[2,1,32], index: 8, kind: input, shape index: {}]   ;;  %s3569_s9 = inlined_call_operand.hbm [shape: f32[2,1,32], index: 9, kind: input, shape index: {}]   ;;  %s3570_s10 = inlined_call_operand.vmem [shape: bf16[2,32,64], index: 10, kind: input, shape index: {}]   ;;  %s3571_s11 = inlined_call_operand.hbm [shape: f32[2,1,64], index: 11, kind: input, shape index: {}]   ;;  %s3572_s12 = inlined_call_operand.vmem [shape: bf16[2,64,32], index: 12, kind: input, shape index: {}]   ;;  %s3573_s13 = inlined_call_operand.vmem [shape: f32[2,1,32], index: 13, kind: input, shape index: {}]   ;;  %s3574_s14 = inlined_call_operand.vmem [shape: f32[2,1,32], index: 14, kind: input, shape index: {}]   ;;  %s3575_s15 = inlined_call_operand.vmem [shape: f32[2,1,32], index: 15, kind: input, shape index: {}]   ;;  %s3576_s16 = inlined_call_operand.vmem [shape: bf16[32,16], index: 16, kind: input, shape index: {}]   ;;  %s3577_s17 = inlined_call_operand.vmem [shape: f32[1,16], index: 17, kind: input, shape index: {}]   ;;  %s3578_s18 = inlined_call_operand.vmem [shape: bf16[16,128], index: 18, kind: input, shape index: {}]   ;;  %s3579_s19 = inlined_call_operand.vmem [shape: f32[1,128], index: 19, kind: input, shape index: {}]   ;;  %s3580_s20 = inlined_call_operand.hbm [shape: f32[8,128], index: 20, kind: output, shape index: {}]  }
   0x1   :  { %3586 = sst [smem:[#allocation20_spill]] %s3560_s0 }
   0x2   :  { %3587 = sst [smem:[#allocation21_spill]] %s3561_s1 }
   0x3   :  { %3588 = sst [smem:[#allocation22_spill]] %s3562_s2 }
   0x4   :  { %3589 = sst [smem:[#allocation23_spill]] %s3563_s3 }
   0x5   :  { %3590 = sst [smem:[#allocation24_spill]] %s3564_s4 }
   0x6   :  { %3591 = sst [smem:[#allocation25_spill]] %s3580_s20 }
   0x7   :  { %25 = vsyncpa [#allocation3], 0 }
   0x8   :  { %26 = vsyncpa [#allocation6], 0 }
   0x9   :  { %27 = vsyncpa [#allocation9], 0 }
   0xa   :  { %28 = vsyncpa [#allocation12], 0 }
   0xb   :  { %29 = vsyncpa [#allocation4], 0  ;;  %s2961_s1 = smov [#allocation5]   ;;  %s3592_s2 = sld [smem:[#allocation23_spill]] }
   0xc   :  { %s52_s22 = sshll.u32 %s2961_s1, 4  ;;  %s53_s22 = int_to_ptr.vmem [resolvable:$true] %s52_s22 }
  0x11   :  { %s2775_s25 = scalar_lea.hbm %s3592_s2, 16 }
  0x12   :  { %p2776_p0 = scmp.ne.s32.totalorder %s3592_s2, %s2775_s25  ;;  %p2779_p1 = scmp.lt.u32.totalorder %s2775_s25, %s3592_s2 }
  0x14   :  { %p2781_p2 = pnand %p2779_p1, %p2776_p0 }
  0x16   :  { %2784 = shalt.err (!%p2781_p2)
}
  0x17   :  { %s2785_s4 = scalar_lea.vmem %s53_s22, 16  ;;  %s2789_s29 = scalar_lea.vmem %s53_s22, 32 }
  0x18   :  { %p2786_p3 = scmp.ne.s32.totalorder %s53_s22, %s2785_s4  ;;  %p2790_p4 = scmp.lt.s32.totalorder %s53_s22, %s53_s22 }
  0x19   :  { %p2791_p5 = scmp.lt.s32.totalorder %s2789_s29, %s2785_s4 }
  0x1b   :  { %p2792_p6 = por %p2791_p5, %p2790_p4 }
  0x1d   :  { %p2793_p7 = pnand %p2792_p6, %p2786_p3 }
  0x1f   :  { %2796 = shalt.err (!%p2793_p7)
}
  0x20   :  { %55 = dma.hbm_to_vmem [thread:$0]  %s3592_s2, 16, %s53_s22, [#allocation6]  }
  0x21   :  { %s2962_s21 = smov [#allocation8]   ;;  %s2963_s23 = smov [#allocation11]  }
  0x22   :  { %s77_s1 = sshll.u32 %s2962_s21, 4  ;;  %s101_s24 = sshll.u32 %s2963_s23, 4  ;;  %s78_s1 = int_to_ptr.vmem [resolvable:$true] %s77_s1  ;;  %s102_s24 = int_to_ptr.vmem [resolvable:$true] %s101_s24 }
  0x23   :  { %s2797_s26 = scalar_lea.hbm %s3567_s7, 32 }
  0x24   :  { %p2798_p8 = scmp.ne.s32.totalorder %s3567_s7, %s2797_s26  ;;  %p2801_p9 = scmp.lt.u32.totalorder %s2797_s26, %s3567_s7 }
  0x26   :  { %p2803_p10 = pnand %p2801_p9, %p2798_p8 }
  0x28   :  { %2806 = shalt.err (!%p2803_p10)
}
  0x29   :  { %s2807_s22 = scalar_lea.vmem %s78_s1, 32  ;;  %p2812_p12 = scmp.lt.s32.totalorder %s78_s1, %s78_s1 }
  0x2a   :  { %p2808_p11 = scmp.ne.s32.totalorder %s78_s1, %s2807_s22  ;;  %p2813_p13 = scmp.lt.s32.totalorder %s2807_s22, %s2807_s22 }
  0x2c   :  { %p2814_p0 = por %p2813_p13, %p2812_p12 }
  0x2e   :  { %p2815_p1 = pnand %p2814_p0, %p2808_p11 }
  0x30   :  { %2818 = shalt.err (!%p2815_p1)
}
  0x31   :  { %s2964_s2 = smov 16   ;;  %s2965_s30 = smov 1  }
  0x32   :  { %83 = dma.hbm_to_vmem [thread:$0]  %s3567_s7, 32, %s78_s1, [#allocation9], %s2964_s2, %s2964_s2, %s2965_s30  }
  0x33   :  { %s2819_s3 = scalar_lea.hbm %s3569_s9, 32 }
  0x34   :  { %p2820_p2 = scmp.ne.s32.totalorder %s3569_s9, %s2819_s3  ;;  %p2823_p3 = scmp.lt.u32.totalorder %s2819_s3, %s3569_s9 }
  0x36   :  { %p2825_p4 = pnand %p2823_p3, %p2820_p2 }
  0x38   :  { %2828 = shalt.err (!%p2825_p4)
}
  0x39   :  { %s2829_s29 = scalar_lea.vmem %s102_s24, 32  ;;  %p2834_p6 = scmp.lt.s32.totalorder %s102_s24, %s102_s24 }
  0x3a   :  { %p2830_p5 = scmp.ne.s32.totalorder %s102_s24, %s2829_s29  ;;  %p2835_p7 = scmp.lt.s32.totalorder %s2829_s29, %s2829_s29 }
  0x3c   :  { %p2836_p8 = por %p2835_p7, %p2834_p6 }
  0x3e   :  { %p2837_p9 = pnand %p2836_p8, %p2830_p5 }
  0x40   :  { %2840 = shalt.err (!%p2837_p9)
}
  0x41   :  { %107 = dma.hbm_to_vmem [thread:$0]  %s3569_s9, 32, %s102_s24, [#allocation12], %s2964_s2, %s2964_s2, %s2965_s30  }
  0x42   :  { %s2966_s22 = smov [#allocation2]   ;;  %s2967_s21 = smov [#allocation7]  }
  0x43   :  { %s37_s0 = sshll.u32 %s2966_s22, 4  ;;  %s63_s23 = sshll.u32 %s2967_s21, 4  ;;  %s38_s0 = int_to_ptr.vmem [resolvable:$true] %s37_s0  ;;  %s64_s23 = int_to_ptr.vmem [resolvable:$true] %s63_s23 }
  0x44   :  { %s3593_s26 = sld [smem:[#allocation21_spill]] }
  0x4a   :  { %s2841_s27 = scalar_lea.hbm %s3593_s26, 64 }
  0x4b   :  { %p2842_p10 = scmp.ne.s32.totalorder %s3593_s26, %s2841_s27  ;;  %p2845_p11 = scmp.lt.u32.totalorder %s2841_s27, %s3593_s26 }
  0x4d   :  { %p2847_p12 = pnand %p2845_p11, %p2842_p10 }
  0x4f   :  { %2850 = shalt.err (!%p2847_p12)
}
  0x50   :  { %s2851_s9 = scalar_lea.vmem %s38_s0, 64  ;;  %p2856_p0 = scmp.lt.s32.totalorder %s38_s0, %s38_s0 }
  0x51   :  { %p2852_p13 = scmp.ne.s32.totalorder %s38_s0, %s2851_s9  ;;  %p2857_p1 = scmp.lt.s32.totalorder %s2851_s9, %s2851_s9 }
  0x53   :  { %p2858_p2 = por %p2857_p1, %p2856_p0 }
  0x55   :  { %p2859_p3 = pnand %p2858_p2, %p2852_p13 }
  0x57   :  { %2862 = shalt.err (!%p2859_p3)
}
  0x58   :  { %43 = dma.hbm_to_vmem [thread:$0]  %s3593_s26, 64, %s38_s0, [#allocation3], %s2964_s2, %s2964_s2, %s2965_s30  }
  0x59   :  { %s2863_s22 = scalar_lea.hbm %s3565_s5, 32 }
  0x5a   :  { %p2864_p4 = scmp.ne.s32.totalorder %s3565_s5, %s2863_s22  ;;  %p2867_p5 = scmp.lt.u32.totalorder %s2863_s22, %s3565_s5 }
  0x5c   :  { %p2869_p6 = pnand %p2867_p5, %p2864_p4 }
  0x5e   :  { %2872 = shalt.err (!%p2869_p6)
}
  0x5f   :  { %s2873_s28 = scalar_lea.vmem %s64_s23, 32  ;;  %p2878_p8 = scmp.lt.s32.totalorder %s64_s23, %s64_s23 }
  0x60   :  { %p2874_p7 = scmp.ne.s32.totalorder %s64_s23, %s2873_s28  ;;  %p2879_p9 = scmp.lt.s32.totalorder %s2873_s28, %s2873_s28 }
  0x62   :  { %p2880_p10 = por %p2879_p9, %p2878_p8 }
  0x64   :  { %p2881_p11 = pnand %p2880_p10, %p2874_p7 }
  0x66   :  { %2884 = shalt.err (!%p2881_p11)
}
  0x67   :  { %69 = dma.hbm_to_vmem [thread:$0]  %s3565_s5, 32, %s64_s23, [#allocation6], %s2964_s2, %s2964_s2, %s2965_s30  }
  0x68   :  { %s2968_s4 = smov [#allocation10]   ;;  %s2969_s9 = smov [#allocation13]  }
  0x69   :  { %s89_s29 = sshll.u32 %s2968_s4, 4  ;;  %s115_s24 = sshll.u32 %s2969_s9, 4  ;;  %s90_s29 = int_to_ptr.vmem [resolvable:$true] %s89_s29  ;;  %s116_s24 = int_to_ptr.vmem [resolvable:$true] %s115_s24 }
  0x6a   :  { %s2885_s20 = scalar_lea.hbm %s3568_s8, 32 }
  0x6b   :  { %p2886_p12 = scmp.ne.s32.totalorder %s3568_s8, %s2885_s20  ;;  %p2889_p13 = scmp.lt.u32.totalorder %s2885_s20, %s3568_s8 }
  0x6d   :  { %p2891_p0 = pnand %p2889_p13, %p2886_p12 }
  0x6f   :  { %2894 = shalt.err (!%p2891_p0)
}
  0x70   :  { %s2895_s5 = scalar_lea.vmem %s90_s29, 32  ;;  %p2900_p2 = scmp.lt.s32.totalorder %s90_s29, %s90_s29 }
  0x71   :  { %p2896_p1 = scmp.ne.s32.totalorder %s90_s29, %s2895_s5  ;;  %p2901_p3 = scmp.lt.s32.totalorder %s2895_s5, %s2895_s5 }
  0x73   :  { %p2902_p4 = por %p2901_p3, %p2900_p2 }
  0x75   :  { %p2903_p5 = pnand %p2902_p4, %p2896_p1 }
  0x77   :  { %2906 = shalt.err (!%p2903_p5)
}
  0x78   :  { %95 = dma.hbm_to_vmem [thread:$0]  %s3568_s8, 32, %s90_s29, [#allocation9], %s2964_s2, %s2964_s2, %s2965_s30  }
  0x79   :  { %s2907_s26 = scalar_lea.hbm %s3571_s11, 32 }
  0x7a   :  { %p2908_p6 = scmp.ne.s32.totalorder %s3571_s11, %s2907_s26  ;;  %p2911_p7 = scmp.lt.u32.totalorder %s2907_s26, %s3571_s11 }
  0x7c   :  { %p2913_p8 = pnand %p2911_p7, %p2908_p6 }
  0x7e   :  { %2916 = shalt.err (!%p2913_p8)
}
  0x7f   :  { %s2917_s20 = scalar_lea.vmem %s116_s24, 32  ;;  %p2922_p10 = scmp.lt.s32.totalorder %s116_s24, %s116_s24 }
  0x80   :  { %p2918_p9 = scmp.ne.s32.totalorder %s116_s24, %s2917_s20  ;;  %p2923_p11 = scmp.lt.s32.totalorder %s2917_s20, %s2917_s20 }
  0x82   :  { %p2924_p12 = por %p2923_p11, %p2922_p10 }
  0x84   :  { %p2925_p13 = pnand %p2924_p12, %p2918_p9 }
  0x86   :  { %2928 = shalt.err (!%p2925_p13)
}
  0x87   :  { %121 = dma.hbm_to_vmem [thread:$0]  %s3571_s11, 32, %s116_s24, [#allocation12], %s2964_s2, %s2964_s2, %s2965_s30  }
  0x88   :  { %2951 = dma.done.wait [#allocation3], 64  }
  0x89   :  { %2952 = vsyncadd [#allocation3], 4294967232 }
  0x8a   :  { %2953 = dma.done.wait [#allocation6], 48  }
  0x8b   :  { %2954 = vsyncadd [#allocation6], 4294967248 }
  0x8c   :  { %2955 = dma.done.wait [#allocation9], 64  }
  0x8d   :  { %2956 = vsyncadd [#allocation9], 4294967232 }
  0x8e   :  { %2957 = dma.done.wait [#allocation12], 64  }
  0x8f   :  { %2958 = vsyncadd [#allocation12], 4294967232  ;;  %vm164_vm0 = vcmask 261120   ;;  %s3594_s25 = sld [smem:[#allocation20_spill]]  ;;  %s3595_s24 = sld [smem:[#allocation24_spill]]  ;;  %v2970_v15 = vmov 0.0  }
  0x90   :  { %2493 = vmatprep.subr.bf16.mxu0 %v2970_v15  ;;  %2501 = vmatprep.subr.bf16.mxu1 %v2970_v15  ;;  %vm2971_vm1 = vmmov 0   ;;  %s3596_s26 = sld [smem:[#allocation22_spill]]  ;;  %v2333_v29 = vld [vmem:[#allocation5] ss:$0 sm:$0xff]  ;;  %v2334_v34 = vld [vmem:[#allocation7] ss:$0 sm:$0xff] }
  0x91   :  { %2497 = vmatprep.mubr.msk.bf16.mxu0 %vm2971_vm1, %v2970_v15  ;;  %2503 = vmatprep.mubr.msk.bf16.mxu1 %vm2971_vm1, %v2970_v15  ;;  %s2972_s4 = smov 112   ;;  %s2973_s9 = smov 96   ;;  %vm319_vm2 = vcmask 130048   ;;  %v3263_v55 = vld [vmem:[#allocation2] ss:$0 sm:$0xff]  ;;  %vm513_vm3 = vcmask 64512  }
  0x92   :  { %v3267_v62 = vld [vmem:[#allocation2 + $0x1] ss:$0 sm:$0xff]  ;;  %s2974_s7 = smov 64   ;;  %vm1112_vm4 = vcmask 523264   ;;  %vm2182_vm5 = vcmask 1040384   ;;  %vm2184_vm6 = vcmask 1041408  }
  0x95   :  { %v160_v0 = vld [vmem:[%s3594_s25] sm:$0xff]  ;;  %v161_v1 = vld [vmem:[%s3594_s25 + $0x8] sm:$0xff] }
  0x96   :  { %v165_v2 = vsel %vm164_vm0, %v160_v0, 0.0  ;;  %v168_v3 = vsel %vm164_vm0, %v161_v1, 0.0  ;;  %v2692_v14 = vld [vmem:[%s3595_s24] sm:$0xff]   ;;  %v2693_v16 = vld [vmem:[%s3595_s24 + $0x8] sm:$0xff]  }
  0x97   :  { %166 = vadd.xlane.f32.xlu0 %v165_v2  ;;  %2494 = vmatpush3.bf16.msra.mxu0 %v2692_v14  ;;  %v2332_v25 = vld [vmem:[%s3596_s26] ss:$0 sm:$0xff] }
  0x98   :  { %2495 = vmatprep.subr.bf16.mxu0 %v2970_v15 }
  0x9b   :  { %169 = vadd.xlane.f32.xlu0 %v168_v3  ;;  %2496 = vmatpush3.bf16.msra.mxu0 %v2693_v16 }
  0x9c   :  { %2507 = vmatprep.subr.bf16.mxu0 %v2970_v15 }
 0x124   :  { %v167_v4 = vpop.xlane.xlu0 %166 }
 0x125   :  { %v172_v5 = vmul.f32 0.03125, %v167_v4 }
 0x127   :  { %v174_v6 = vsub.f32 %v160_v0, %v172_v5 }
 0x128   :  { %v170_v7 = vpop.xlane.xlu0 %169 }
 0x129   :  { %v173_v8 = vmul.f32 0.03125, %v170_v7  ;;  %v176_v9 = vmul.f32 %v174_v6, %v174_v6 }
 0x12b   :  { %v175_v10 = vsub.f32 %v161_v1, %v173_v8  ;;  %v178_v11 = vsel %vm164_vm0, %v176_v9, 0.0  ;;  %v3271_v8 = vld [vmem:[#allocation2 + $0x3] ss:$0 sm:$0xff] }
 0x12c   :  { %179 = vadd.xlane.f32.xlu1 %v178_v11 }
 0x12d   :  { %v177_v12 = vmul.f32 %v175_v10, %v175_v10 }
 0x12f   :  { %v181_v13 = vsel %vm164_vm0, %v177_v12, 0.0 }
 0x130   :  { %182 = vadd.xlane.f32.xlu1 %v181_v13 }
 0x1b9   :  { %v180_v17 = vpop.xlane.xlu1 %179 }
 0x1ba   :  { %v184_v18 = vmul.f32 0.03125, %v180_v17 }
 0x1bc   :  { %v186_v19 = vadd.f32 1e-12, %v184_v18 }
 0x1bd   :  { %v183_v20 = vpop.xlane.xlu1 %182 }
 0x1be   :  { %2715 = vrsqrt.f32 %v186_v19  ;;  %v185_v21 = vmul.f32 0.03125, %v183_v20 }
 0x1c0   :  { %v187_v22 = vadd.f32 1e-12, %v185_v21 }
 0x1c2   :  { %2717 = vrsqrt.f32 %v187_v22 }
 0x1c8   :  { %v2716_v23 = vpop.eup %2715 }
 0x1c9   :  { %v190_v24 = vmul.f32 %v2716_v23, %v174_v6 }
 0x1cb   :  { %v198_v28 = vmul.f32 %v2332_v25, %v190_v24 }
 0x1cc   :  { %v2718_v26 = vpop.eup %2717 }
 0x1cd   :  { %v191_v27 = vmul.f32 %v2718_v26, %v175_v10  ;;  %v3210_v31 = vadd.f32 %v2333_v29, %v198_v28  ;;  %v3273_v10 = vld [vmem:[#allocation2 + $0x2] ss:$0 sm:$0xff] }
 0x1cf   :  { %v199_v30 = vmul.f32 %v2332_v25, %v191_v27 }
 0x1d1   :  { %v3212_v32 = vadd.f32 %v2333_v29, %v199_v30 }
 0x1d3   :  { %v216_v33 = vpack.c.bf16 %v3212_v32, %v3210_v31 }
 0x1d5   :  { %2498 = vmatmul.mubr.msk.bf16.vlgmr.msra.gmra.mrb[0].mxu0 %vm164_vm0, %v216_v33 }
 0x1d6   :  { %2509 = vmatprep.mubr.msk.bf16.mxu0 %vm2971_vm1, %v2970_v15 }
 0x2a8   :  { %v273_v35 = vpop.f32.mrb[0].mxu0 }
 0x2a9   :  { %v3219_v36 = vadd.f32 %v2334_v34, %v273_v35  ;;  %v2499_v37 = vpop.f32.mrb[1].mxu0 }
 0x2aa   :  { %v276_v38 = vpop.f32.mrb[2].mxu0 }
 0x2ab   :  { %v3221_v39 = vadd.f32 %v2334_v34, %v276_v38  ;;  %281 = vrot.lane.b32.xlu0 %v3219_v36, %s2972_s4  ;;  %v2500_v40 = vpop.f32.mrb[3].mxu0  ;;  %v288_v41 = vpack.c.bf16 %v3219_v36, %v3219_v36 }
 0x2ad   :  { %285 = vrot.lane.b32.xlu1 %v3221_v39, %s2972_s4  ;;  %v290_v46 = vpack.c.bf16 %v3221_v39, %v3221_v39 }
 0x2b1   :  { %317 = vrot.lane.b32.xlu1 %v288_v41, %s2973_s9 }
 0x31d   :  { %v3230_v42 = vpop.permute.xlu0 %281 }
 0x31e   :  { %v289_v43 = vpack.c.bf16 %v3230_v42, %v3230_v42 }
 0x31f   :  { %v3234_v44 = vpop.permute.xlu1 %285 }
 0x320   :  { %v291_v45 = vpack.c.bf16 %v3234_v44, %v3234_v44  ;;  %367 = vrot.lane.b32.xlu1 %v289_v43, %s2973_s9 }
 0x322   :  { %465 = vrot.lane.b32.xlu0 %v291_v45, %s2973_s9 }
 0x323   :  { %v318_v47 = vpop.permute.xlu1 %317 }
 0x324   :  { %416 = vrot.lane.b32.xlu1 %v290_v46, %s2973_s9  ;;  %v324_v48 = vsel %vm319_vm2, %v318_v47, 0 }
 0x325   :  { %2502 = vmatpush3.bf16.xpose.msra.mxu1 %v324_v48 }
 0x326   :  { %2513 = vmatprep.subr.bf16.mxu1 %v2970_v15 }
 0x32c   :  { %2504 = vmatmul.mubr.msk.bf16.vlgmr.msra.gmra.mrb[0].mxu1 %vm319_vm2, %v288_v41 }
 0x32d   :  { %2515 = vmatprep.mubr.msk.bf16.mxu1 %vm2971_vm1, %v2970_v15 }
 0x392   :  { %v368_v49 = vpop.permute.xlu1 %367 }
 0x393   :  { %v373_v50 = vsel %vm319_vm2, %v368_v49, 0 }
 0x394   :  { %2508 = vmatpush3.bf16.xpose.msra.mxu0 %v373_v50  ;;  %v466_v53 = vpop.permute.xlu0 %465 }
 0x395   :  { %2519 = vmatprep.subr.bf16.mxu0 %v2970_v15  ;;  %v471_v54 = vsel %vm319_vm2, %v466_v53, 0 }
 0x396   :  { %v417_v51 = vpop.permute.xlu1 %416 }
 0x397   :  { %v422_v52 = vsel %vm319_vm2, %v417_v51, 0 }
 0x398   :  { %2514 = vmatpush3.bf16.xpose.msra.mxu1 %v422_v52 }
 0x399   :  { %2525 = vmatprep.subr.mxu1 %v2970_v15 }
 0x39b   :  { %2510 = vmatmul.mubr.msk.bf16.vlgmr.msra.gmra.mrb[4].mxu0 %vm319_vm2, %v289_v43 }
 0x39c   :  { %2520 = vmatpush3.bf16.xpose.msra.mxu0 %v471_v54  ;;  %2521 = vmatprep.mubr.msk.bf16.mxu0 %vm2971_vm1, %v2970_v15 }
 0x39d   :  { %2535 = vmatprep.subr.mxu0 %v2970_v15 }
 0x39f   :  { %2516 = vmatmul.mubr.msk.bf16.vlgmr.msra.gmra.mrb[4].mxu1 %vm319_vm2, %v290_v46 }
 0x3a0   :  { %2527 = vmatprep.mubr.msk.f32.mxu1 %vm2971_vm1, %v2970_v15 }
 0x3a3   :  { %2522 = vmatmul.mubr.msk.bf16.vlgmr.msra.gmra.mrb[8].mxu0 %vm319_vm2, %v291_v45 }
 0x3a4   :  { %2537 = vmatprep.mubr.msk.f32.mxu0 %vm2971_vm1, %v2970_v15 }
 0x3ff   :  { %v360_v56 = vpop.f32.mrb[0].mxu1 }
 0x400   :  { %v361_v57 = vadd.f32 %v3263_v55, %v360_v56  ;;  %v2505_v58 = vpop.f32.mrb[1].mxu1 }
 0x401   :  { %v363_v59 = vpop.f32.mrb[2].mxu1 }
 0x402   :  { %v2506_v60 = vpop.f32.mrb[3].mxu1  ;;  %v514_v61 = vsel %vm513_vm3, %v361_v57, -inf }
 0x403   :  { %515 = vmax.xlane.f32.xlu0 %v514_v61  ;;  %v2694_v61 = vld [vmem:[%s3566_s6] sm:$0xff]  }
 0x46e   :  { %v409_v63 = vpop.f32.mrb[4].mxu0 }
 0x46f   :  { %v410_v0 = vadd.f32 %v3267_v62, %v409_v63  ;;  %v2511_v1 = vpop.f32.mrb[5].mxu0  ;;  %v2695_v63 = vld [vmem:[%s3566_s6 + $0x8] sm:$0xff]  }
 0x470   :  { %v412_v2 = vpop.f32.mrb[6].mxu0 }
 0x471   :  { %v2512_v3 = vpop.f32.mrb[7].mxu0  ;;  %v517_v4 = vsel %vm513_vm3, %v410_v0, -inf }
 0x472   :  { %v458_v5 = vpop.f32.mrb[4].mxu1  ;;  %518 = vmax.xlane.f32.xlu1 %v517_v4 }
 0x473   :  { %v2517_v6 = vpop.f32.mrb[5].mxu1  ;;  %v459_v16 = vadd.f32 %v3273_v10, %v458_v5 }
 0x474   :  { %v461_v7 = vpop.f32.mrb[6].mxu1 }
 0x475   :  { %v2518_v9 = vpop.f32.mrb[7].mxu1  ;;  %v520_v19 = vsel %vm513_vm3, %v459_v16, -inf }
 0x476   :  { %v507_v11 = vpop.f32.mrb[8].mxu0 }
 0x477   :  { %v508_v12 = vadd.f32 %v3271_v8, %v507_v11  ;;  %v2523_v13 = vpop.f32.mrb[9].mxu0 }
 0x478   :  { %v510_v14 = vpop.f32.mrb[10].mxu0 }
 0x479   :  { %v2524_v17 = vpop.f32.mrb[11].mxu0  ;;  %v523_v18 = vsel %vm513_vm3, %v508_v12, -inf }
 0x47a   :  { %524 = vmax.xlane.f32.xlu0 %v523_v18 }
 0x47e   :  { %521 = vmax.xlane.f32.xlu0 %v520_v19 }
 0x483   :  { %558 = vrot.lane.b32.xlu1 %v3219_v36, %s2974_s7 }
 0x490   :  { %v516_v20 = vpop.xlane.xlu0 %515 }
 0x491   :  { %v526_v21 = vsub.f32 %v361_v57, %v516_v20 }
 0x493   :  { %v530_v22 = vmul.f32 1.442695, %v526_v21 }
 0x495   :  { %2719 = vpow2.f32 %v530_v22 }
 0x49f   :  { %v2720_v23 = vpop.eup %2719 }
 0x4a0   :  { %v538_v24 = vsel %vm513_vm3, %v2720_v23, 0.0 }
 0x4a1   :  { %539 = vadd.xlane.f32.xlu0 %v538_v24 }
 0x4ff   :  { %v519_v25 = vpop.xlane.xlu1 %518 }
 0x500   :  { %v527_v26 = vsub.f32 %v410_v0, %v519_v25 }
 0x502   :  { %v532_v27 = vmul.f32 1.442695, %v527_v26 }
 0x503   :  { %v559_v28 = vpop.permute.xlu1 %558 }
 0x504   :  { %2721 = vpow2.f32 %v532_v27  ;;  %2526 = vmatpush3.msra.mxu1 %v559_v28 }
 0x505   :  { %2530 = vmatprep.subr.mxu1 %v2970_v15 }
 0x507   :  { %v525_v29 = vpop.xlane.xlu0 %524 }
 0x508   :  { %v529_v30 = vsub.f32 %v508_v12, %v525_v29 }
 0x50a   :  { %v536_v33 = vmul.f32 1.442695, %v529_v30 }
 0x50b   :  { %v522_v38 = vpop.xlane.xlu0 %521 }
 0x50c   :  { %2723 = vpow2.f32 %v536_v33  ;;  %v528_v41 = vsub.f32 %v459_v16, %v522_v38  ;;  %v2350_v16 = vld [vmem:[#allocation8] ss:$0 sm:$0xff] }
 0x50d   :  { %v2697_v38 = vld [vmem:[%s3570_s10 + $0x8] sm:$0xff]  }
 0x50e   :  { %v2722_v34 = vpop.eup %2721  ;;  %v534_v43 = vmul.f32 1.442695, %v528_v41 }
 0x50f   :  { %v541_v35 = vsel %vm513_vm3, %v2722_v34, 0.0 }
 0x510   :  { %542 = vadd.xlane.f32.xlu1 %v541_v35 }
 0x516   :  { %v2724_v36 = vpop.eup %2723 }
 0x517   :  { %v547_v37 = vsel %vm513_vm3, %v2724_v36, 0.0 }
 0x518   :  { %548 = vadd.xlane.f32.xlu0 %v547_v37 }
 0x521   :  { %786 = vrot.lane.b32.xlu1 %v3234_v44, %s2974_s7 }
 0x52e   :  { %634 = vrot.lane.b32.xlu0 %v3230_v42, %s2974_s7  ;;  %v540_v40 = vpop.xlane.xlu0 %539 }
 0x52f   :  { %2725 = vrcp.f32 %v540_v40 }
 0x530   :  { %2727 = vpow2.f32 %v534_v43 }
 0x532   :  { %710 = vrot.lane.b32.xlu0 %v3221_v39, %s2974_s7 }
 0x539   :  { %v2726_v45 = vpop.eup %2725 }
 0x53a   :  { %v554_v46 = vmul.f32 %v2726_v45, %v2720_v23  ;;  %v2728_v44 = vpop.eup %2727 }
 0x53b   :  { %v544_v47 = vsel %vm513_vm3, %v2728_v44, 0.0 }
 0x53c   :  { %2528 = vmatmul.mubr.msk.f32.vlgmr.msra.gmra.mrb[8].mxu1 %vm513_vm3, %v554_v46 }
 0x53d   :  { %2532 = vmatprep.mubr.msk.f32.mxu1 %vm2971_vm1, %v2970_v15 }
 0x545   :  { %545 = vadd.xlane.f32.xlu1 %v544_v47 }
 0x59d   :  { %v543_v42 = vpop.xlane.xlu1 %542 }
 0x59e   :  { %2729 = vrcp.f32 %v543_v42  ;;  %v2354_v42 = vld [vmem:[#allocation10] ss:$0 sm:$0xff] }
 0x5a1   :  { %v787_v51 = vpop.permute.xlu1 %786 }
 0x5a5   :  { %v549_v48 = vpop.xlane.xlu0 %548 }
 0x5a6   :  { %2731 = vrcp.f32 %v549_v48 }
 0x5a8   :  { %v2730_v49 = vpop.eup %2729 }
 0x5a9   :  { %v555_v50 = vmul.f32 %v2730_v49, %v2722_v34  ;;  %v635_v39 = vpop.permute.xlu0 %634 }
 0x5aa   :  { %2531 = vmatpush3.msra.mxu1 %v635_v39 }
 0x5ab   :  { %2533 = vmatmul.mubr.msk.f32.vlgmr.msra.gmra.mrb[10].mxu1 %vm513_vm3, %v555_v50  ;;  %2540 = vmatprep.subr.mxu1 %v2970_v15 }
 0x5ac   :  { %2541 = vmatpush3.msra.mxu1 %v787_v51  ;;  %2542 = vmatprep.mubr.msk.f32.mxu1 %vm2971_vm1, %v2970_v15  ;;  %v2355_v51 = vld [vmem:[#allocation11] ss:$0 sm:$0xff] }
 0x5ad   :  { %v711_v52 = vpop.permute.xlu0 %710  ;;  %2553 = vmatprep.subr.bf16.mxu1 %v2970_v15 }
 0x5ae   :  { %2536 = vmatpush3.msra.mxu0 %v711_v52 }
 0x5af   :  { %2545 = vmatprep.subr.bf16.mxu0 %v2970_v15 }
 0x5b0   :  { %v2732_v53 = vpop.eup %2731 }
 0x5b1   :  { %v557_v54 = vmul.f32 %v2732_v53, %v2724_v36 }
 0x5b3   :  { %2543 = vmatmul.mubr.msk.f32.vlgmr.msra.gmra.mrb[12].mxu1 %vm513_vm3, %v557_v54 }
 0x5b4   :  { %2557 = vmatprep.mubr.msk.bf16.mxu1 %vm2971_vm1, %v2970_v15 }
 0x5d2   :  { %v546_v56 = vpop.xlane.xlu1 %545 }
 0x5d3   :  { %2733 = vrcp.f32 %v546_v56 }
 0x5dd   :  { %v2734_v57 = vpop.eup %2733 }
 0x5de   :  { %v556_v58 = vmul.f32 %v2734_v57, %v2728_v44  ;;  %v2698_v57 = vld [vmem:[%s3572_s12] sm:$0xff]  }
 0x5e0   :  { %2538 = vmatmul.mubr.msk.f32.vlgmr.msra.gmra.mrb[12].mxu0 %vm513_vm3, %v556_v58  ;;  %v2699_v58 = vld [vmem:[%s3572_s12 + $0x8] sm:$0xff]  }
 0x5e1   :  { %2549 = vmatprep.mubr.msk.bf16.mxu0 %vm2971_vm1, %v2970_v15  ;;  %2546 = vmatpush3.bf16.msra.mxu0 %v2694_v61  ;;  %v2356_v61 = vld [vmem:[#allocation13] ss:$0 sm:$0xff] }
 0x5e2   :  { %2547 = vmatprep.subr.bf16.mxu0 %v2970_v15 }
 0x5e5   :  { %2548 = vmatpush3.bf16.msra.mxu0 %v2695_v63 }
 0x5e6   :  { %2561 = vmatprep.subr.bf16.mxu0 %v2970_v15 }
 0x60f   :  { %v630_v59 = vpop.f32.mrb[8].mxu1 }
 0x610   :  { %v2529_v60 = vpop.f32.mrb[9].mxu1 }
 0x611   :  { %v2701_v60 = vld [vmem:[%s3572_s12 + $0x18] sm:$0xff]  }
 0x67e   :  { %v706_v0 = vpop.f32.mrb[10].mxu1 }
 0x67f   :  { %v2534_v1 = vpop.f32.mrb[11].mxu1 }
 0x686   :  { %v858_v2 = vpop.f32.mrb[12].mxu1 }
 0x687   :  { %v2682_v3 = vpack.i.bf16 %v858_v2, %v706_v0  ;;  %v2544_v4 = vpop.f32.mrb[13].mxu1 }
 0x689   :  { %2683 = vrot.lane.b32.xlu0 %v2682_v3, %s2964_s2 }
 0x6b3   :  { %v782_v5 = vpop.f32.mrb[12].mxu0 }
 0x6b4   :  { %v2539_v6 = vpop.f32.mrb[13].mxu0 }
 0x6fb   :  { %v2684_v7 = vpop.permute.xlu0 %2683 }
 0x6fc   :  { %v2686_v9 = vunpack.i.h.bf16 %v2684_v7  ;;  %v2685_v11 = vunpack.i.l.bf16 %v2684_v7 }
 0x6fe   :  { %v866_v12 = vsel %vm319_vm2, %v630_v59, %v2685_v11  ;;  %v871_v13 = vsel %vm319_vm2, %v782_v5, %v2686_v9  ;;  %v2700_v59 = vld [vmem:[%s3572_s12 + $0x10] sm:$0xff]  }
 0x6ff   :  { %v876_v14 = vpack.c.bf16 %v871_v13, %v866_v12 }
 0x701   :  { %2550 = vmatmul.mubr.msk.bf16.vlgmr.msra.gmra.mrb[16].mxu0 %vm164_vm0, %v876_v14 }
 0x702   :  { %2569 = vmatprep.mubr.msk.bf16.mxu0 %vm2971_vm1, %v2970_v15  ;;  %2562 = vmatpush3.bf16.msra.mxu0 %v2698_v57 }
 0x703   :  { %2563 = vmatprep.subr.bf16.mxu0 %v2970_v15 }
 0x706   :  { %2564 = vmatpush3.bf16.msra.mxu0 %v2699_v58  ;;  %v2366_v58 = vld [vmem:[%s3574_s14] ss:$0 sm:$0xff] }
 0x707   :  { %2565 = vmatprep.subr.bf16.mxu0 %v2970_v15 }
 0x70a   :  { %2566 = vmatpush3.bf16.msra.mxu0 %v2700_v59 }
 0x70b   :  { %2567 = vmatprep.subr.bf16.mxu0 %v2970_v15 }
 0x70e   :  { %2568 = vmatpush3.bf16.msra.mxu0 %v2701_v60 }
 0x70f   :  { %2587 = vmatprep.subr.bf16.mxu0 %v2970_v15 }
 0x7d4   :  { %v933_v17 = vpop.f32.mrb[16].mxu0 }
 0x7d5   :  { %v934_v18 = vadd.f32 %v2350_v16, %v933_v17  ;;  %v2551_v19 = vpop.f32.mrb[17].mxu0 }
 0x7d6   :  { %v936_v20 = vpop.f32.mrb[18].mxu0 }
 0x7d7   :  { %v937_v21 = vadd.f32 %v2350_v16, %v936_v20  ;;  %v2552_v22 = vpop.f32.mrb[19].mxu0  ;;  %v940_v23 = vadd.f32 %v934_v18, %v3210_v31 }
 0x7d9   :  { %v944_v24 = vsel %vm164_vm0, %v940_v23, 0.0  ;;  %v941_v25 = vadd.f32 %v937_v21, %v3212_v32  ;;  %v2696_v32 = vld [vmem:[%s3570_s10] sm:$0xff]  }
 0x7da   :  { %945 = vadd.xlane.f32.xlu0 %v944_v24  ;;  %2554 = vmatpush3.bf16.msra.mxu1 %v2696_v32 }
 0x7db   :  { %v947_v26 = vsel %vm164_vm0, %v941_v25, 0.0  ;;  %2555 = vmatprep.subr.bf16.mxu1 %v2970_v15 }
 0x7dc   :  { %948 = vadd.xlane.f32.xlu1 %v947_v26 }
 0x7de   :  { %2556 = vmatpush3.bf16.msra.mxu1 %v2697_v38 }
 0x7df   :  { %2573 = vmatprep.subr.bf16.mxu1 %v2970_v15 }
 0x867   :  { %v946_v27 = vpop.xlane.xlu0 %945 }
 0x868   :  { %v950_v28 = vmul.f32 0.03125, %v946_v27  ;;  %v2360_v27 = vld [vmem:[%s3573_s13] ss:$0 sm:$0xff] }
 0x869   :  { %v949_v29 = vpop.xlane.xlu1 %948 }
 0x86a   :  { %v952_v30 = vsub.f32 %v940_v23, %v950_v28  ;;  %v951_v33 = vmul.f32 0.03125, %v949_v29 }
 0x86c   :  { %v953_v34 = vsub.f32 %v941_v25, %v951_v33  ;;  %v954_v35 = vmul.f32 %v952_v30, %v952_v30 }
 0x86e   :  { %v956_v36 = vsel %vm164_vm0, %v954_v35, 0.0  ;;  %v955_v37 = vmul.f32 %v953_v34, %v953_v34 }
 0x86f   :  { %957 = vadd.xlane.f32.xlu1 %v956_v36 }
 0x870   :  { %v959_v31 = vsel %vm164_vm0, %v955_v37, 0.0 }
 0x871   :  { %960 = vadd.xlane.f32.xlu0 %v959_v31 }
 0x8fc   :  { %v958_v40 = vpop.xlane.xlu1 %957 }
 0x8fd   :  { %v962_v41 = vmul.f32 0.03125, %v958_v40 }
 0x8fe   :  { %v961_v43 = vpop.xlane.xlu0 %960 }
 0x8ff   :  { %v964_v45 = vadd.f32 1e-12, %v962_v41  ;;  %v963_v46 = vmul.f32 0.03125, %v961_v43 }
 0x901   :  { %2735 = vrsqrt.f32 %v964_v45  ;;  %v965_v44 = vadd.f32 1e-12, %v963_v46 }
 0x903   :  { %2737 = vrsqrt.f32 %v965_v44 }
 0x90b   :  { %v2736_v47 = vpop.eup %2735 }
 0x90c   :  { %v968_v48 = vmul.f32 %v2736_v47, %v952_v30 }
 0x90d   :  { %v2738_v49 = vpop.eup %2737 }
 0x90e   :  { %v976_v50 = vmul.f32 %v2354_v42, %v968_v48  ;;  %v969_v39 = vmul.f32 %v2738_v49, %v953_v34  ;;  %v2702_v49 = vld [vmem:[%s3595_s24 + $0x10] sm:$0xff]  }
 0x910   :  { %v977_v52 = vmul.f32 %v2354_v42, %v969_v39  ;;  %v984_v53 = vadd.f32 %v2355_v51, %v976_v50  ;;  %v2703_v50 = vld [vmem:[%s3595_s24 + $0x18] sm:$0xff]  }
 0x912   :  { %v985_v54 = vadd.f32 %v2355_v51, %v977_v52 }
 0x914   :  { %v990_v56 = vpack.c.bf16 %v985_v54, %v984_v53 }
 0x916   :  { %2558 = vmatmul.mubr.msk.bf16.vlgmr.msra.gmra.mrb[16].mxu1 %vm164_vm0, %v990_v56 }
 0x917   :  { %2577 = vmatprep.mubr.msk.bf16.mxu1 %vm2971_vm1, %v2970_v15  ;;  %2574 = vmatpush3.bf16.msra.mxu1 %v2702_v49 }
 0x918   :  { %2575 = vmatprep.subr.bf16.mxu1 %v2970_v15 }
 0x91b   :  { %2576 = vmatpush3.bf16.msra.mxu1 %v2703_v50 }
 0x91c   :  { %2581 = vmatprep.subr.bf16.mxu1 %v2970_v15 }
 0x9e9   :  { %v1047_v63 = vpop.f32.mrb[16].mxu1 }
 0x9ea   :  { %v1048_v0 = vadd.f32 %v2356_v61, %v1047_v63  ;;  %v2559_v1 = vpop.f32.mrb[17].mxu1 }
 0x9eb   :  { %v1050_v2 = vpop.f32.mrb[18].mxu1 }
 0x9ec   :  { %v1054_v3 = vmul.f32 %v1048_v0, %v1048_v0  ;;  %v1051_v4 = vadd.f32 %v2356_v61, %v1050_v2  ;;  %v2560_v5 = vpop.f32.mrb[19].mxu1 }
 0x9ed   :  { %v2372_v5 = vld [vmem:[#allocation7 + $0x1] ss:$0 sm:$0xff] }
 0x9ee   :  { %v1056_v6 = vmul.f32 %v1054_v3, %v1048_v0  ;;  %v1055_v7 = vmul.f32 %v1051_v4, %v1051_v4 }
 0x9f0   :  { %v1058_v9 = vmul.f32 0.044715, %v1056_v6  ;;  %v1057_v11 = vmul.f32 %v1055_v7, %v1051_v4 }
 0x9f2   :  { %v1060_v12 = vadd.f32 %v1058_v9, %v1048_v0  ;;  %v1059_v13 = vmul.f32 0.044715, %v1057_v11 }
 0x9f4   :  { %v1062_v14 = vmul.f32 0.7978846, %v1060_v12  ;;  %v1061_v16 = vadd.f32 %v1059_v13, %v1051_v4 }
 0x9f6   :  { %2739 = vtanh.f32 %v1062_v14  ;;  %v1063_v17 = vmul.f32 0.7978846, %v1061_v16 }
 0x9f8   :  { %2741 = vtanh.f32 %v1063_v17 }
 0xa00   :  { %v2740_v18 = vpop.eup %2739 }
 0xa01   :  { %v1066_v19 = vadd.f32 1.0, %v2740_v18 }
 0xa02   :  { %v2742_v20 = vpop.eup %2741 }
 0xa03   :  { %v1068_v21 = vmul.f32 0.5, %v1066_v19  ;;  %v1067_v22 = vadd.f32 1.0, %v2742_v20 }
 0xa05   :  { %v1069_v23 = vmul.f32 0.5, %v1067_v22  ;;  %v1070_v24 = vmul.f32 %v1068_v21, %v1048_v0  ;;  %v2367_v0 = vld [vmem:[%s3575_s15] ss:$0 sm:$0xff] }
 0xa07   :  { %v1071_v25 = vmul.f32 %v1069_v23, %v1051_v4 }
 0xa09   :  { %v1080_v26 = vpack.c.bf16 %v1071_v25, %v1070_v24 }
 0xa0b   :  { %2570 = vmatmul.mubr.msk.bf16.vlgmr.msra.gmra.mrb[20].mxu0 %vm1112_vm4, %v1080_v26 }
 0xa0c   :  { %2589 = vmatprep.mubr.msk.bf16.mxu0 %vm2971_vm1, %v2970_v15 }
 0xade   :  { %v1150_v28 = vpop.f32.mrb[20].mxu0 }
 0xadf   :  { %v1151_v29 = vadd.f32 %v2360_v27, %v1150_v28  ;;  %v2571_v30 = vpop.f32.mrb[21].mxu0 }
 0xae0   :  { %v1153_v33 = vpop.f32.mrb[22].mxu0 }
 0xae1   :  { %v1154_v34 = vadd.f32 %v2360_v27, %v1153_v33  ;;  %v2572_v35 = vpop.f32.mrb[23].mxu0  ;;  %v1157_v36 = vadd.f32 %v1151_v29, %v984_v53 }
 0xae3   :  { %v1161_v37 = vsel %vm164_vm0, %v1157_v36, 0.0  ;;  %v1158_v31 = vadd.f32 %v1154_v34, %v985_v54 }
 0xae4   :  { %1162 = vadd.xlane.f32.xlu1 %v1161_v37 }
 0xae5   :  { %v1164_v32 = vsel %vm164_vm0, %v1158_v31, 0.0 }
 0xae6   :  { %1165 = vadd.xlane.f32.xlu0 %v1164_v32 }
 0xb71   :  { %v1163_v38 = vpop.xlane.xlu1 %1162 }
 0xb72   :  { %v1167_v40 = vmul.f32 0.03125, %v1163_v38 }
 0xb73   :  { %v1166_v41 = vpop.xlane.xlu0 %1165 }
 0xb74   :  { %v1169_v43 = vsub.f32 %v1157_v36, %v1167_v40  ;;  %v1168_v45 = vmul.f32 0.03125, %v1166_v41 }
 0xb76   :  { %v1170_v46 = vsub.f32 %v1158_v31, %v1168_v45  ;;  %v1171_v44 = vmul.f32 %v1169_v43, %v1169_v43 }
 0xb78   :  { %v1173_v47 = vsel %vm164_vm0, %v1171_v44, 0.0  ;;  %v1172_v42 = vmul.f32 %v1170_v46, %v1170_v46 }
 0xb79   :  { %1174 = vadd.xlane.f32.xlu1 %v1173_v47 }
 0xb7a   :  { %v1176_v48 = vsel %vm164_vm0, %v1172_v42, 0.0 }
 0xb7b   :  { %1177 = vadd.xlane.f32.xlu0 %v1176_v48 }
 0xc06   :  { %v1175_v39 = vpop.xlane.xlu1 %1174 }
 0xc07   :  { %v1179_v51 = vmul.f32 0.03125, %v1175_v39 }
 0xc08   :  { %v1178_v52 = vpop.xlane.xlu0 %1177 }
 0xc09   :  { %v1181_v53 = vadd.f32 1e-12, %v1179_v51  ;;  %v1180_v54 = vmul.f32 0.03125, %v1178_v52 }
 0xc0b   :  { %2743 = vrsqrt.f32 %v1181_v53  ;;  %v1182_v56 = vadd.f32 1e-12, %v1180_v54 }
 0xc0d   :  { %2745 = vrsqrt.f32 %v1182_v56 }
 0xc15   :  { %v2744_v57 = vpop.eup %2743 }
 0xc16   :  { %v1185_v59 = vmul.f32 %v2744_v57, %v1169_v43 }
 0xc17   :  { %v2746_v60 = vpop.eup %2745 }
 0xc18   :  { %v1193_v61 = vmul.f32 %v2366_v58, %v1185_v59  ;;  %v1186_v63 = vmul.f32 %v2746_v60, %v1170_v46 }
 0xc1a   :  { %v1194_v1 = vmul.f32 %v2366_v58, %v1186_v63  ;;  %v3378_v2 = vadd.f32 %v2367_v0, %v1193_v61 }
 0xc1c   :  { %v3380_v3 = vadd.f32 %v2367_v0, %v1194_v1 }
 0xc1e   :  { %v1208_v4 = vpack.c.bf16 %v3380_v3, %v3378_v2 }
 0xc20   :  { %2578 = vmatmul.mubr.msk.bf16.vlgmr.msra.gmra.mrb[20].mxu1 %vm164_vm0, %v1208_v4 }
 0xc21   :  { %2583 = vmatprep.mubr.msk.bf16.mxu1 %vm2971_vm1, %v2970_v15 }
 0xcf3   :  { %v1266_v6 = vpop.f32.mrb[20].mxu1 }
 0xcf4   :  { %v3387_v7 = vadd.f32 %v2372_v5, %v1266_v6  ;;  %v2579_v9 = vpop.f32.mrb[21].mxu1 }
 0xcf5   :  { %v1269_v11 = vpop.f32.mrb[22].mxu1 }
 0xcf6   :  { %v3389_v12 = vadd.f32 %v2372_v5, %v1269_v11  ;;  %1274 = vrot.lane.b32.xlu1 %v3387_v7, %s2972_s4  ;;  %v2580_v13 = vpop.f32.mrb[23].mxu1  ;;  %v1281_v14 = vpack.c.bf16 %v3387_v7, %v3387_v7 }
 0xcf8   :  { %1278 = vrot.lane.b32.xlu0 %v3389_v12, %s2972_s4  ;;  %v1283_v16 = vpack.c.bf16 %v3389_v12, %v3389_v12 }
 0xcfa   :  { %1286 = vrot.lane.b32.xlu1 %v1281_v14, %s2973_s9 }
 0xcfc   :  { %1384 = vrot.lane.b32.xlu0 %v1283_v16, %s2973_s9 }
 0xd68   :  { %v3401_v17 = vpop.permute.xlu1 %1274 }
 0xd69   :  { %v1282_v18 = vpack.c.bf16 %v3401_v17, %v3401_v17 }
 0xd6a   :  { %v3405_v19 = vpop.permute.xlu0 %1278 }
 0xd6b   :  { %1335 = vrot.lane.b32.xlu1 %v1282_v18, %s2973_s9  ;;  %v1284_v21 = vpack.c.bf16 %v3405_v19, %v3405_v19 }
 0xd6c   :  { %v1287_v20 = vpop.permute.xlu1 %1286 }
 0xd6d   :  { %v1292_v22 = vsel %vm319_vm2, %v1287_v20, 0 }
 0xd6e   :  { %2582 = vmatpush3.bf16.xpose.msra.mxu1 %v1292_v22  ;;  %v1385_v23 = vpop.permute.xlu0 %1384 }
 0xd6f   :  { %1433 = vrot.lane.b32.xlu1 %v1284_v21, %s2973_s9  ;;  %2593 = vmatprep.subr.bf16.mxu1 %v2970_v15  ;;  %v1390_v24 = vsel %vm319_vm2, %v1385_v23, 0 }
 0xd75   :  { %2584 = vmatmul.mubr.msk.bf16.vlgmr.msra.gmra.mrb[24].mxu1 %vm319_vm2, %v1281_v14 }
 0xd76   :  { %2594 = vmatpush3.bf16.xpose.msra.mxu1 %v1390_v24  ;;  %2595 = vmatprep.mubr.msk.bf16.mxu1 %vm2971_vm1, %v2970_v15 }
 0xd77   :  { %2605 = vmatprep.subr.mxu1 %v2970_v15 }
 0xd7d   :  { %2596 = vmatmul.mubr.msk.bf16.vlgmr.msra.gmra.mrb[28].mxu1 %vm319_vm2, %v1283_v16 }
 0xd7e   :  { %2607 = vmatprep.mubr.msk.f32.mxu1 %vm2971_vm1, %v2970_v15 }
 0xddd   :  { %v1336_v25 = vpop.permute.xlu1 %1335 }
 0xdde   :  { %v1341_v26 = vsel %vm319_vm2, %v1336_v25, 0 }
 0xddf   :  { %2588 = vmatpush3.bf16.xpose.msra.mxu0 %v1341_v26 }
 0xde0   :  { %2599 = vmatprep.subr.bf16.mxu0 %v2970_v15 }
 0xde1   :  { %v1434_v27 = vpop.permute.xlu1 %1433 }
 0xde2   :  { %v1439_v28 = vsel %vm319_vm2, %v1434_v27, 0 }
 0xde6   :  { %2590 = vmatmul.mubr.msk.bf16.vlgmr.msra.gmra.mrb[24].mxu0 %vm319_vm2, %v1282_v18 }
 0xde7   :  { %2600 = vmatpush3.bf16.xpose.msra.mxu0 %v1439_v28  ;;  %2601 = vmatprep.mubr.msk.bf16.mxu0 %vm2971_vm1, %v2970_v15  ;;  %v2704_v28 = vld [vmem:[%s3566_s6 + $0x10] sm:$0xff]  }
 0xde8   :  { %2615 = vmatprep.subr.mxu0 %v2970_v15 }
 0xdee   :  { %2602 = vmatmul.mubr.msk.bf16.vlgmr.msra.gmra.mrb[28].mxu0 %vm319_vm2, %v1284_v21 }
 0xdef   :  { %2617 = vmatprep.mubr.msk.f32.mxu0 %vm2971_vm1, %v2970_v15 }
 0xe48   :  { %v1328_v29 = vpop.f32.mrb[24].mxu1 }
 0xe49   :  { %v1329_v30 = vadd.f32 %v3263_v55, %v1328_v29  ;;  %v2585_v33 = vpop.f32.mrb[25].mxu1 }
 0xe4a   :  { %v1331_v34 = vpop.f32.mrb[26].mxu1  ;;  %v2705_v33 = vld [vmem:[%s3566_s6 + $0x18] sm:$0xff]   ;;  %s2975_s6 = smov [#allocation14]  }
 0xe4b   :  { %v2586_v35 = vpop.f32.mrb[27].mxu1  ;;  %v1481_v36 = vsel %vm513_vm3, %v1329_v30, -inf }
 0xe4c   :  { %1482 = vmax.xlane.f32.xlu1 %v1481_v36 }
 0xe50   :  { %v1426_v37 = vpop.f32.mrb[28].mxu1 }
 0xe51   :  { %v2597_v31 = vpop.f32.mrb[29].mxu1  ;;  %v1427_v49 = vadd.f32 %v3273_v10, %v1426_v37 }
 0xe52   :  { %v1429_v32 = vpop.f32.mrb[30].mxu1 }
 0xe53   :  { %v2598_v38 = vpop.f32.mrb[31].mxu1  ;;  %v1487_v51 = vsel %vm513_vm3, %v1427_v49, -inf }
 0xeb9   :  { %v1377_v40 = vpop.f32.mrb[24].mxu0 }
 0xeba   :  { %v1378_v41 = vadd.f32 %v3267_v62, %v1377_v40  ;;  %v2591_v43 = vpop.f32.mrb[25].mxu0 }
 0xebb   :  { %v1380_v45 = vpop.f32.mrb[26].mxu0 }
 0xebc   :  { %v2592_v46 = vpop.f32.mrb[27].mxu0  ;;  %v1484_v44 = vsel %vm513_vm3, %v1378_v41, -inf }
 0xebd   :  { %1485 = vmax.xlane.f32.xlu0 %v1484_v44 }
 0xec1   :  { %v1475_v55 = vpop.f32.mrb[28].mxu0 }
 0xec2   :  { %v1476_v47 = vadd.f32 %v3271_v8, %v1475_v55  ;;  %v2603_v42 = vpop.f32.mrb[29].mxu0  ;;  %v2388_v55 = vld [vmem:[#allocation8 + $0x1] ss:$0 sm:$0xff] }
 0xec3   :  { %v1478_v48 = vpop.f32.mrb[30].mxu0 }
 0xec4   :  { %v2604_v50 = vpop.f32.mrb[31].mxu0  ;;  %v1490_v39 = vsel %vm513_vm3, %v1476_v47, -inf }
 0xec5   :  { %1491 = vmax.xlane.f32.xlu0 %v1490_v39 }
 0xec9   :  { %1488 = vmax.xlane.f32.xlu0 %v1487_v51 }
 0xed9   :  { %v1483_v62 = vpop.xlane.xlu1 %1482 }
 0xeda   :  { %v1493_v52 = vsub.f32 %v1329_v30, %v1483_v62 }
 0xedc   :  { %v1497_v53 = vmul.f32 1.442695, %v1493_v52 }
 0xede   :  { %2747 = vpow2.f32 %v1497_v53 }
 0xee8   :  { %v2748_v54 = vpop.eup %2747 }
 0xee9   :  { %v1505_v56 = vsel %vm513_vm3, %v2748_v54, 0.0 }
 0xeea   :  { %1506 = vadd.xlane.f32.xlu1 %v1505_v56 }
 0xefb   :  { %1601 = vrot.lane.b32.xlu1 %v3401_v17, %s2974_s7 }
 0xf4a   :  { %v1486_v8 = vpop.xlane.xlu0 %1485 }
 0xf4b   :  { %v1494_v10 = vsub.f32 %v1378_v41, %v1486_v8 }
 0xf4d   :  { %v1499_v57 = vmul.f32 1.442695, %v1494_v10 }
 0xf4f   :  { %2749 = vpow2.f32 %v1499_v57 }
 0xf52   :  { %v1492_v58 = vpop.xlane.xlu0 %1491 }
 0xf53   :  { %v1496_v59 = vsub.f32 %v1476_v47, %v1492_v58 }
 0xf55   :  { %v1503_v60 = vmul.f32 1.442695, %v1496_v59 }
 0xf56   :  { %v1489_v4 = vpop.xlane.xlu0 %1488 }
 0xf57   :  { %2751 = vpow2.f32 %v1503_v60  ;;  %v1495_v5 = vsub.f32 %v1427_v49, %v1489_v4 }
 0xf59   :  { %v2750_v61 = vpop.eup %2749  ;;  %v1501_v6 = vmul.f32 1.442695, %v1495_v5 }
 0xf5a   :  { %v1508_v63 = vsel %vm513_vm3, %v2750_v61, 0.0 }
 0xf5b   :  { %1509 = vadd.xlane.f32.xlu0 %v1508_v63  ;;  %2753 = vpow2.f32 %v1501_v6  ;;  %v2707_v63 = vld [vmem:[%s3570_s10 + $0x18] sm:$0xff]  }
 0xf61   :  { %v2752_v0 = vpop.eup %2751 }
 0xf62   :  { %v1514_v1 = vsel %vm513_vm3, %v2752_v0, 0.0 }
 0xf63   :  { %1515 = vadd.xlane.f32.xlu1 %v1514_v1 }
 0xf65   :  { %v2754_v9 = vpop.eup %2753 }
 0xf66   :  { %v1511_v11 = vsel %vm513_vm3, %v2754_v9, 0.0 }
 0xf71   :  { %1525 = vrot.lane.b32.xlu0 %v3387_v7, %s2974_s7 }
 0xf74   :  { %1753 = vrot.lane.b32.xlu1 %v3405_v19, %s2974_s7 }
 0xf75   :  { %1677 = vrot.lane.b32.xlu0 %v3389_v12, %s2974_s7 }
 0xf77   :  { %v1507_v13 = vpop.xlane.xlu1 %1506 }
 0xf78   :  { %2755 = vrcp.f32 %v1507_v13  ;;  %v2392_v13 = vld [vmem:[#allocation10 + $0x1] ss:$0 sm:$0xff] }
 0xf7b   :  { %v1602_v17 = vpop.permute.xlu1 %1601 }
 0xf82   :  { %v2756_v16 = vpop.eup %2755 }
 0xf83   :  { %v1521_v7 = vmul.f32 %v2756_v16, %v2748_v54 }
 0xf98   :  { %1512 = vadd.xlane.f32.xlu1 %v1511_v11 }
 0xfe8   :  { %v1510_v14 = vpop.xlane.xlu0 %1509 }
 0xfe9   :  { %2757 = vrcp.f32 %v1510_v14 }
 0xfec   :  { %v1526_v18 = vpop.permute.xlu0 %1525 }
 0xfed   :  { %2606 = vmatpush3.msra.mxu1 %v1526_v18  ;;  %v2393_v18 = vld [vmem:[#allocation11 + $0x1] ss:$0 sm:$0xff] }
 0xfee   :  { %2608 = vmatmul.mubr.msk.f32.vlgmr.msra.gmra.mrb[14].mxu1 %vm513_vm3, %v1521_v7  ;;  %2610 = vmatprep.subr.mxu1 %v2970_v15 }
 0xfef   :  { %2611 = vmatpush3.msra.mxu1 %v1602_v17  ;;  %2612 = vmatprep.mubr.msk.f32.mxu1 %vm2971_vm1, %v2970_v15 }
 0xff0   :  { %v1516_v12 = vpop.xlane.xlu1 %1515  ;;  %v1678_v19 = vpop.permute.xlu0 %1677  ;;  %2620 = vmatprep.subr.mxu1 %v2970_v15 }
 0xff1   :  { %2759 = vrcp.f32 %v1516_v12  ;;  %2616 = vmatpush3.msra.mxu0 %v1678_v19 }
 0xff2   :  { %2625 = vmatprep.subr.bf16.mxu0 %v2970_v15 }
 0xff3   :  { %v2758_v20 = vpop.eup %2757 }
 0xff4   :  { %v1522_v21 = vmul.f32 %v2758_v20, %v2750_v61  ;;  %v1754_v22 = vpop.permute.xlu1 %1753 }
 0xff6   :  { %2613 = vmatmul.mubr.msk.f32.vlgmr.msra.gmra.mrb[32].mxu1 %vm513_vm3, %v1522_v21 }
 0xff7   :  { %2621 = vmatpush3.msra.mxu1 %v1754_v22  ;;  %2622 = vmatprep.mubr.msk.f32.mxu1 %vm2971_vm1, %v2970_v15  ;;  %v2708_v22 = vld [vmem:[%s3572_s12 + $0x20] sm:$0xff]  }
 0xff8   :  { %2633 = vmatprep.subr.bf16.mxu1 %v2970_v15 }
 0xffb   :  { %v2760_v23 = vpop.eup %2759 }
 0xffc   :  { %v1524_v24 = vmul.f32 %v2760_v23, %v2752_v0  ;;  %v2709_v23 = vld [vmem:[%s3572_s12 + $0x28] sm:$0xff]  }
 0xffe   :  { %2623 = vmatmul.mubr.msk.f32.vlgmr.msra.gmra.mrb[34].mxu1 %vm513_vm3, %v1524_v24  ;;  %v2710_v24 = vld [vmem:[%s3572_s12 + $0x30] sm:$0xff]  }
 0xfff   :  { %2637 = vmatprep.mubr.msk.bf16.mxu1 %vm2971_vm1, %v2970_v15 }
0x1025   :  { %v1513_v25 = vpop.xlane.xlu1 %1512 }
0x1026   :  { %2761 = vrcp.f32 %v1513_v25  ;;  %v2711_v25 = vld [vmem:[%s3572_s12 + $0x38] sm:$0xff]  }
0x1030   :  { %v2762_v26 = vpop.eup %2761 }
0x1031   :  { %v1523_v27 = vmul.f32 %v2762_v26, %v2754_v9  ;;  %v2398_v26 = vld [vmem:[#allocation13 + $0x1] ss:$0 sm:$0xff] }
0x1033   :  { %2618 = vmatmul.mubr.msk.f32.vlgmr.msra.gmra.mrb[14].mxu0 %vm513_vm3, %v1523_v27 }
0x1034   :  { %2629 = vmatprep.mubr.msk.bf16.mxu0 %vm2971_vm1, %v2970_v15  ;;  %2626 = vmatpush3.bf16.msra.mxu0 %v2704_v28 }
0x1035   :  { %2627 = vmatprep.subr.bf16.mxu0 %v2970_v15 }
0x1038   :  { %2628 = vmatpush3.bf16.msra.mxu0 %v2705_v33 }
0x1039   :  { %2641 = vmatprep.subr.bf16.mxu0 %v2970_v15 }
0x10c1   :  { %v1597_v29 = vpop.f32.mrb[14].mxu1 }
0x10c2   :  { %v2609_v30 = vpop.f32.mrb[15].mxu1 }
0x10c9   :  { %v1673_v34 = vpop.f32.mrb[32].mxu1 }
0x10ca   :  { %v2614_v35 = vpop.f32.mrb[33].mxu1 }
0x10d1   :  { %v1825_v36 = vpop.f32.mrb[34].mxu1 }
0x10d2   :  { %v2687_v37 = vpack.i.bf16 %v1825_v36, %v1673_v34  ;;  %v2624_v31 = vpop.f32.mrb[35].mxu1 }
0x10d4   :  { %2688 = vrot.lane.b32.xlu0 %v2687_v37, %s2964_s2 }
0x1106   :  { %v1749_v32 = vpop.f32.mrb[14].mxu0 }
0x1107   :  { %v2619_v38 = vpop.f32.mrb[15].mxu0 }
0x1146   :  { %v2689_v40 = vpop.permute.xlu0 %2688 }
0x1147   :  { %v2691_v41 = vunpack.i.h.bf16 %v2689_v40  ;;  %v2690_v43 = vunpack.i.l.bf16 %v2689_v40 }
0x1149   :  { %v1833_v45 = vsel %vm319_vm2, %v1597_v29, %v2690_v43  ;;  %v1838_v46 = vsel %vm319_vm2, %v1749_v32, %v2691_v41 }
0x114a   :  { %v1844_v44 = vpack.c.bf16 %v1838_v46, %v1833_v45 }
0x114c   :  { %2630 = vmatmul.mubr.msk.bf16.vlgmr.msra.gmra.mrb[32].mxu0 %vm164_vm0, %v1844_v44 }
0x114d   :  { %2649 = vmatprep.mubr.msk.bf16.mxu0 %vm2971_vm1, %v2970_v15  ;;  %2642 = vmatpush3.bf16.msra.mxu0 %v2708_v22 }
0x114e   :  { %2643 = vmatprep.subr.bf16.mxu0 %v2970_v15 }
0x1151   :  { %2644 = vmatpush3.bf16.msra.mxu0 %v2709_v23 }
0x1152   :  { %2645 = vmatprep.subr.bf16.mxu0 %v2970_v15 }
0x1155   :  { %2646 = vmatpush3.bf16.msra.mxu0 %v2710_v24 }
0x1156   :  { %2647 = vmatprep.subr.bf16.mxu0 %v2970_v15 }
0x1159   :  { %2648 = vmatpush3.bf16.msra.mxu0 %v2711_v25  ;;  %v2420_v25 = vld [vmem:[%s3575_s15 + $0x1] ss:$0 sm:$0xff] }
0x121f   :  { %v1902_v47 = vpop.f32.mrb[32].mxu0 }
0x1220   :  { %v1903_v42 = vadd.f32 %v2388_v55, %v1902_v47  ;;  %v2631_v48 = vpop.f32.mrb[33].mxu0 }
0x1221   :  { %v1905_v49 = vpop.f32.mrb[34].mxu0 }
0x1222   :  { %v1906_v50 = vadd.f32 %v2388_v55, %v1905_v49  ;;  %v2632_v39 = vpop.f32.mrb[35].mxu0  ;;  %v1909_v51 = vadd.f32 %v1903_v42, %v3378_v2 }
0x1224   :  { %v1915_v62 = vsel %vm164_vm0, %v1909_v51, 0.0  ;;  %v1910_v52 = vadd.f32 %v1906_v50, %v3380_v3  ;;  %v2706_v3 = vld [vmem:[%s3570_s10 + $0x10] sm:$0xff]  }
0x1225   :  { %1916 = vadd.xlane.f32.xlu0 %v1915_v62  ;;  %2634 = vmatpush3.bf16.msra.mxu1 %v2706_v3 }
0x1226   :  { %v1918_v53 = vsel %vm164_vm0, %v1910_v52, 0.0  ;;  %2635 = vmatprep.subr.bf16.mxu1 %v2970_v15 }
0x1227   :  { %1919 = vadd.xlane.f32.xlu1 %v1918_v53 }
0x1229   :  { %2636 = vmatpush3.bf16.msra.mxu1 %v2707_v63 }
0x122a   :  { %2653 = vmatprep.subr.bf16.mxu1 %v2970_v15 }
0x12b2   :  { %v1917_v54 = vpop.xlane.xlu0 %1916 }
0x12b3   :  { %v1921_v56 = vmul.f32 0.03125, %v1917_v54 }
0x12b4   :  { %v1920_v8 = vpop.xlane.xlu1 %1919 }
0x12b5   :  { %v1923_v10 = vsub.f32 %v1909_v51, %v1921_v56  ;;  %v1922_v57 = vmul.f32 0.03125, %v1920_v8  ;;  %v2411_v51 = vld [vmem:[%s3573_s13 + $0x1] ss:$0 sm:$0xff] }
0x12b7   :  { %v1924_v58 = vsub.f32 %v1910_v52, %v1922_v57  ;;  %v1925_v59 = vmul.f32 %v1923_v10, %v1923_v10 }
0x12b9   :  { %v1927_v60 = vsel %vm164_vm0, %v1925_v59, 0.0  ;;  %v1926_v61 = vmul.f32 %v1924_v58, %v1924_v58 }
0x12ba   :  { %1928 = vadd.xlane.f32.xlu0 %v1927_v60 }
0x12bb   :  { %v1930_v2 = vsel %vm164_vm0, %v1926_v61, 0.0 }
0x12bc   :  { %1931 = vadd.xlane.f32.xlu1 %v1930_v2 }
0x1347   :  { %v1929_v0 = vpop.xlane.xlu0 %1928 }
0x1348   :  { %v1933_v1 = vmul.f32 0.03125, %v1929_v0 }
0x1349   :  { %v1932_v4 = vpop.xlane.xlu1 %1931 }
0x134a   :  { %v1935_v5 = vadd.f32 1e-12, %v1933_v1  ;;  %v1934_v6 = vmul.f32 0.03125, %v1932_v4 }
0x134c   :  { %2763 = vrsqrt.f32 %v1935_v5  ;;  %v1936_v9 = vadd.f32 1e-12, %v1934_v6 }
0x134e   :  { %2765 = vrsqrt.f32 %v1936_v9  ;;  %v2712_v9 = vld [vmem:[%s3576_s16] sm:$0xff]  }
0x1356   :  { %v2764_v11 = vpop.eup %2763 }
0x1357   :  { %v1939_v14 = vmul.f32 %v2764_v11, %v1923_v10  ;;  %v2713_v11 = vld [vmem:[%s3576_s16 + $0x8] sm:$0xff]  }
0x1358   :  { %v2766_v16 = vpop.eup %2765 }
0x1359   :  { %v1947_v7 = vmul.f32 %v2392_v13, %v1939_v14  ;;  %v1940_v17 = vmul.f32 %v2766_v16, %v1924_v58 }
0x135b   :  { %v1948_v12 = vmul.f32 %v2392_v13, %v1940_v17  ;;  %v1955_v19 = vadd.f32 %v2393_v18, %v1947_v7 }
0x135d   :  { %v1956_v20 = vadd.f32 %v2393_v18, %v1948_v12 }
0x135f   :  { %v1962_v21 = vpack.c.bf16 %v1956_v20, %v1955_v19 }
0x1361   :  { %2638 = vmatmul.mubr.msk.bf16.vlgmr.msra.gmra.mrb[36].mxu1 %vm164_vm0, %v1962_v21  ;;  %v2419_v21 = vld [vmem:[%s3574_s14 + $0x1] ss:$0 sm:$0xff] }
0x1362   :  { %2657 = vmatprep.mubr.msk.bf16.mxu1 %vm2971_vm1, %v2970_v15  ;;  %2654 = vmatpush3.bf16.msra.mxu1 %v2712_v9 }
0x1363   :  { %2655 = vmatprep.subr.bf16.mxu1 %v2970_v15 }
0x1366   :  { %2656 = vmatpush3.bf16.msra.mxu1 %v2713_v11 }
0x1367   :  { %2661 = vmatprep.subr.bf16.mxu1 %v2970_v15 }
0x1434   :  { %v2020_v27 = vpop.f32.mrb[36].mxu1 }
0x1435   :  { %v2021_v28 = vadd.f32 %v2398_v26, %v2020_v27  ;;  %v2639_v29 = vpop.f32.mrb[37].mxu1 }
0x1436   :  { %v2023_v30 = vpop.f32.mrb[38].mxu1 }
0x1437   :  { %v2027_v33 = vmul.f32 %v2021_v28, %v2021_v28  ;;  %v2024_v34 = vadd.f32 %v2398_v26, %v2023_v30  ;;  %v2640_v35 = vpop.f32.mrb[39].mxu1 }
0x1438   :  { %v2421_v35 = vld [vmem:[%s3577_s17] ss:$0 sm:$0xff] }
0x1439   :  { %v2029_v36 = vmul.f32 %v2027_v33, %v2021_v28  ;;  %v2028_v37 = vmul.f32 %v2024_v34, %v2024_v34 }
0x143b   :  { %v2031_v31 = vmul.f32 0.044715, %v2029_v36  ;;  %v2030_v32 = vmul.f32 %v2028_v37, %v2024_v34 }
0x143d   :  { %v2033_v38 = vadd.f32 %v2031_v31, %v2021_v28  ;;  %v2032_v40 = vmul.f32 0.044715, %v2030_v32 }
0x143f   :  { %v2035_v41 = vmul.f32 0.7978846, %v2033_v38  ;;  %v2034_v43 = vadd.f32 %v2032_v40, %v2024_v34 }
0x1441   :  { %2767 = vtanh.f32 %v2035_v41  ;;  %v2036_v45 = vmul.f32 0.7978846, %v2034_v43 }
0x1443   :  { %2769 = vtanh.f32 %v2036_v45 }
0x144b   :  { %v2768_v46 = vpop.eup %2767 }
0x144c   :  { %v2039_v44 = vadd.f32 1.0, %v2768_v46 }
0x144d   :  { %v2770_v55 = vpop.eup %2769 }
0x144e   :  { %v2041_v47 = vmul.f32 0.5, %v2039_v44  ;;  %v2040_v42 = vadd.f32 1.0, %v2770_v55 }
0x1450   :  { %v2042_v48 = vmul.f32 0.5, %v2040_v42  ;;  %v2043_v49 = vmul.f32 %v2041_v47, %v2021_v28 }
0x1452   :  { %v2044_v50 = vmul.f32 %v2042_v48, %v2024_v34  ;;  %v2714_v34 = vld [vmem:[%s3578_s18] sm:$0xff]   ;;  %s2320_s18 = sshll.u32 %s2975_s6, 4  ;;  %s2321_s18 = int_to_ptr.vmem [resolvable:$true] %s2320_s18 }
0x1453   :  { %s2929_s17 = scalar_lea.vmem %s2321_s18, 128  ;;  %p2934_p1 = scmp.lt.s32.totalorder %s2321_s18, %s2321_s18 }
0x1454   :  { %v2054_v39 = vpack.c.bf16 %v2044_v50, %v2043_v49  ;;  %p2930_p0 = scmp.ne.s32.totalorder %s2321_s18, %s2929_s17  ;;  %p2935_p2 = scmp.lt.s32.totalorder %s2929_s17, %s2929_s17 }
0x1456   :  { %2650 = vmatmul.mubr.msk.bf16.vlgmr.msra.gmra.mrb[36].mxu0 %vm1112_vm4, %v2054_v39  ;;  %p2936_p3 = por %p2935_p2, %p2934_p1 }
0x1458   :  { %p2937_p4 = pnand %p2936_p3, %p2930_p0 }
0x1529   :  { %v2124_v62 = vpop.f32.mrb[36].mxu0 }
0x152a   :  { %v2125_v52 = vadd.f32 %v2411_v51, %v2124_v62  ;;  %v2651_v53 = vpop.f32.mrb[37].mxu0 }
0x152b   :  { %v2127_v54 = vpop.f32.mrb[38].mxu0 }
0x152c   :  { %v2128_v56 = vadd.f32 %v2411_v51, %v2127_v54  ;;  %v2652_v8 = vpop.f32.mrb[39].mxu0  ;;  %v2131_v10 = vadd.f32 %v2125_v52, %v1955_v19 }
0x152e   :  { %v2137_v57 = vsel %vm164_vm0, %v2131_v10, 0.0  ;;  %v2132_v58 = vadd.f32 %v2128_v56, %v1956_v20 }
0x152f   :  { %2138 = vadd.xlane.f32.xlu1 %v2137_v57 }
0x1530   :  { %v2140_v59 = vsel %vm164_vm0, %v2132_v58, 0.0 }
0x1531   :  { %2141 = vadd.xlane.f32.xlu0 %v2140_v59 }
0x15bc   :  { %v2139_v60 = vpop.xlane.xlu1 %2138 }
0x15bd   :  { %v2143_v61 = vmul.f32 0.03125, %v2139_v60 }
0x15be   :  { %v2142_v2 = vpop.xlane.xlu0 %2141 }
0x15bf   :  { %v2145_v3 = vsub.f32 %v2131_v10, %v2143_v61  ;;  %v2144_v63 = vmul.f32 0.03125, %v2142_v2 }
0x15c1   :  { %v2146_v0 = vsub.f32 %v2132_v58, %v2144_v63  ;;  %v2147_v1 = vmul.f32 %v2145_v3, %v2145_v3 }
0x15c3   :  { %v2149_v4 = vsel %vm164_vm0, %v2147_v1, 0.0  ;;  %v2148_v5 = vmul.f32 %v2146_v0, %v2146_v0 }
0x15c4   :  { %2150 = vadd.xlane.f32.xlu1 %v2149_v4 }
0x15c5   :  { %v2152_v6 = vsel %vm164_vm0, %v2148_v5, 0.0 }
0x15c6   :  { %2153 = vadd.xlane.f32.xlu0 %v2152_v6 }
0x1651   :  { %v2151_v13 = vpop.xlane.xlu1 %2150 }
0x1652   :  { %v2155_v14 = vmul.f32 0.03125, %v2151_v13 }
0x1653   :  { %v2154_v16 = vpop.xlane.xlu0 %2153 }
0x1654   :  { %v2157_v7 = vadd.f32 1e-12, %v2155_v14  ;;  %v2156_v17 = vmul.f32 0.03125, %v2154_v16 }
0x1656   :  { %2771 = vrsqrt.f32 %v2157_v7  ;;  %v2158_v18 = vadd.f32 1e-12, %v2156_v17 }
0x1658   :  { %2773 = vrsqrt.f32 %v2158_v18 }
0x1660   :  { %v2772_v12 = vpop.eup %2771 }
0x1661   :  { %v2161_v19 = vmul.f32 %v2772_v12, %v2145_v3 }
0x1662   :  { %v2774_v20 = vpop.eup %2773 }
0x1663   :  { %v2162_v22 = vmul.f32 %v2774_v20, %v2146_v0  ;;  %v2169_v23 = vmul.f32 %v2419_v21, %v2161_v19 }
0x1665   :  { %v2170_v24 = vmul.f32 %v2419_v21, %v2162_v22  ;;  %v2177_v27 = vadd.f32 %v2420_v25, %v2169_v23 }
0x1667   :  { %v2178_v26 = vadd.f32 %v2420_v25, %v2170_v24 }
0x1669   :  { %v2180_v28 = vrot.slane %v2178_v26, 7 }
0x166b   :  { %v2183_v29 = vsel %vm2182_vm5, %v2177_v27, %v2180_v28 }
0x166c   :  { %v2185_v30 = vsel %vm2184_vm6, %v2183_v29, 0.0 }
0x166d   :  { %v2190_v33 = vpack.c.bf16 %v2185_v30, %v2185_v30 }
0x166f   :  { %2658 = vmatmul.mubr.msk.bf16.vlgmr.msra.gmra.mrb[40].mxu1 %vm164_vm0, %v2190_v33 }
0x1670   :  { %2663 = vmatprep.mubr.msk.bf16.mxu1 %vm2971_vm1, %v2970_v15  ;;  %2662 = vmatpush3.bf16.msra.mxu1 %v2714_v34  ;;  %v2425_v15 = vld [vmem:[%s3579_s19] ss:$0 sm:$0xff] }
0x1742   :  { %v2247_v36 = vpop.f32.mrb[40].mxu1 }
0x1743   :  { %v2248_v37 = vadd.f32 %v2421_v35, %v2247_v36  ;;  %v2659_v31 = vpop.f32.mrb[41].mxu1 }
0x1744   :  { %v2250_v32 = vpop.f32.mrb[42].mxu1 }
0x1745   :  { %v2253_v38 = vmax.f32 %v2248_v37, 0.0  ;;  %v2660_v40 = vpop.f32.mrb[43].mxu1 }
0x1747   :  { %v2256_v41 = vpack.c.bf16 %v2253_v38, %v2253_v38 }
0x1749   :  { %2664 = vmatmul.mubr.msk.bf16.vlgmr.msra.gmra.mrb[44].mxu1 %vm319_vm2, %v2256_v41 }
0x181c   :  { %v2307_v43 = vpop.f32.mrb[44].mxu1 }
0x181d   :  { %v2308_v45 = vadd.f32 %v2425_v15, %v2307_v43  ;;  %v2665_v46 = vpop.f32.mrb[45].mxu1 }
0x181e   :  { %v2310_v44 = vpop.f32.mrb[46].mxu1 }
0x181f   :  { %2313 = vst [vmem:[#allocation14] sm:$0xff] %v2308_v45  ;;  %v2666_v55 = vpop.f32.mrb[47].mxu1 }
0x1820   :  { %2940 = shalt.err (!%p2937_p4)
}
0x1821   :  { %s3597_s23 = sld [smem:[#allocation25_spill]] }
0x1827   :  { %s2941_s19 = scalar_lea.hbm %s3597_s23, 128 }
0x1828   :  { %p2942_p5 = scmp.ne.s32.totalorder %s3597_s23, %s2941_s19  ;;  %p2945_p6 = scmp.lt.u32.totalorder %s2941_s19, %s3597_s23 }
0x182a   :  { %p2947_p7 = pnand %p2945_p6, %p2942_p5 }
0x182c   :  { %2950 = shalt.err (!%p2947_p7)
}
0x182d   :  { %2323 = dma.vmem_to_hbm [thread:$0]  %s2321_s18, 128, %s3597_s23, [#allocation4]  }
0x182e   :  { %2959 = dma.done.wait [#allocation4], 128  }
0x182f   :  { %2960 = vsyncadd [#allocation4], 4294967168 }
0x1830   :  { %2327 = vsyncpa [#allocation3], 1 }
0x1831   :  { %2328 = vsyncpa [#allocation6], 1 }
0x1832   :  { %2329 = vsyncpa [#allocation9], 1 }
0x1833   :  { %2330 = vsyncpa [#allocation12], 1 }
0x1834   :  { %2331 = vsyncpa [#allocation4], 1 }

</bundles_post_ra>
